<compile_context>
chip_gen: v5e
topology: v5e:2x2
jax: 0.10.0
libtpu: 0.0.40
codegen_flags: <defaults>
</compile_context>

<pallas_src>
import functools

import jax
import jax.numpy as jnp
from jax.experimental import pallas as pl
from jax.experimental.pallas import tpu as pltpu


_EPS = 1e-5
# Leave headroom on v7x (64 MiB physical VMEM); well under v5e/v6e's 128 MiB.
# TODO(synk): on v7x with large d_ff, single-buffer the constant-index weight
# blocks (pipeline_mode) and/or add a K-tile axis over d_ff in the FFN kernel.
_VMEM_LIMIT = 48 * 1024 * 1024
# MXU operand dtype (accumulation stays f32 via preferred_element_type).
_MXU_DTYPE = jnp.bfloat16


def _mxu(x):
    return x.astype(_MXU_DTYPE)


def _cparams(*sem):
    return pltpu.CompilerParams(dimension_semantics=sem,
                                vmem_limit_bytes=_VMEM_LIMIT)


def _choose_tile(n, target):
    """Largest multiple-of-8 divisor of n that is <= target, else the full n."""
    for t in range(min(n, target), 0, -1):
        if n % t == 0 and t % 8 == 0:
            return t
    return n


# ----------------------------- Pallas kernels ------------------------------

def _packed_proj_kernel(x_ref, w_ref, b_ref, *out_refs):
    # One MXU pass over the concatenated weight [W_0 | W_1 | ...]; the packed
    # (tm, k*d) result is split with static lane slices into k outputs.
    d_out = out_refs[0].shape[-1]
    acc = jnp.dot(_mxu(x_ref[...]), w_ref[...],
                  preferred_element_type=jnp.float32) + b_ref[...]
    for j, o_ref in enumerate(out_refs):
        o_ref[...] = acc[:, j * d_out:(j + 1) * d_out].astype(o_ref.dtype)


def _attn_fused_kernel(q_ref, k_ref, v_ref, res_ref, wo3_ref, bo_ref,
                       z_ref, attn_ref, stats_ref, *, scale):
    # q: (H, tq, dh), k/v: (H, Lk, dh) -- heads-batched contractions.
    # Epilogue fuses output projection + residual add + per-tile BN partials.
    n_heads = q_ref.shape[0]
    qf = (q_ref[...].astype(jnp.float32) * scale).astype(_MXU_DTYPE)
    s = jnp.einsum("hqd,hkd->hqk", qf, _mxu(k_ref[...]),
                   preferred_element_type=jnp.float32)
    m = jnp.max(s, axis=-1, keepdims=True)
    p = jnp.exp(s - m)
    a = p * (1.0 / jnp.sum(p, axis=-1, keepdims=True))   # exact softmax
    attn_ref[...] = a.astype(attn_ref.dtype)
    ctx = jnp.einsum("hqk,hkd->hqd", _mxu(a), _mxu(v_ref[...]),
                     preferred_element_type=jnp.float32)
    # Output projection: z = res + bo + sum_h ctx_h @ Wo[h]  (Wo pre-reshaped
    # to (H, dh, d) in the wrapper; H static, clean 2-D dots).
    z = res_ref[...].astype(jnp.float32) + bo_ref[...]
    for h in range(n_heads):
        z = z + jnp.dot(_mxu(ctx[h]), wo3_ref[h],
                        preferred_element_type=jnp.float32)
    z_ref[...] = z.astype(z_ref.dtype)
    # Per-tile BN partials (no cross-iteration accumulator -> grid stays parallel).
    stats_ref[0:1, :] = jnp.sum(z, axis=0, keepdims=True)
    stats_ref[1:2, :] = jnp.sum(z * z, axis=0, keepdims=True)


def _bn_normalize(z, stats, gamma, beta, inv_n):
    mean = stats[0:1, :] * inv_n
    var = stats[1:2, :] * inv_n - mean * mean          # biased batch variance
    return (z - mean) * (gamma * jax.lax.rsqrt(var + _EPS)) + beta


def _bn_qproj_kernel(z_ref, stats_ref, gamma_ref, beta_ref, wq_ref, bq_ref,
                     q_ref, xn_ref, *, inv_n):
    # xn = BN(z) ; q = xn @ Wq + bq  (BN-apply fused with the next projection).
    xn = _bn_normalize(z_ref[...].astype(jnp.float32), stats_ref[...],
                       gamma_ref[...], beta_ref[...], inv_n)
    xn_ref[...] = xn.astype(xn_ref.dtype)
    q = jnp.dot(_mxu(xn), wq_ref[...],
                preferred_element_type=jnp.float32) + bq_ref[...]
    q_ref[...] = q.astype(q_ref.dtype)


def _bn_ffn_kernel(z_ref, stats_ref, gamma_ref, beta_ref,
                   w1_ref, b1_ref, w2_ref, b2_ref,
                   z3_ref, stats3_ref, *, inv_n):
    # x2 = BN(z) ; y = relu(x2@W1+b1)@W2+b2 ; z3 = x2 + y ; BN3 partials.
    xn = _bn_normalize(z_ref[...].astype(jnp.float32), stats_ref[...],
                       gamma_ref[...], beta_ref[...], inv_n)
    h = jnp.dot(_mxu(xn), w1_ref[...],
                preferred_element_type=jnp.float32) + b1_ref[...]
    h = jnp.maximum(h, 0.0)
    y = jnp.dot(_mxu(h), w2_ref[...],
                preferred_element_type=jnp.float32) + b2_ref[...]
    z3 = xn + y
    z3_ref[...] = z3.astype(z3_ref.dtype)
    stats3_ref[0:1, :] = jnp.sum(z3, axis=0, keepdims=True)
    stats3_ref[1:2, :] = jnp.sum(z3 * z3, axis=0, keepdims=True)


def _bn_apply_kernel(z_ref, stats_ref, gamma_ref, beta_ref, o_ref, *, inv_n):
    o_ref[...] = _bn_normalize(z_ref[...].astype(jnp.float32), stats_ref[...],
                               gamma_ref[...], beta_ref[...], inv_n
                               ).astype(o_ref.dtype)


# ------------------------------ wrappers ------------------------------------

def packed_proj(x, weights, biases, *, tm, out_dtype):
    """One pallas_call computing [x @ w_i + b_i] via a single packed matmul."""
    n, din = x.shape
    d = weights[0].shape[1]
    k = len(weights)
    w = jnp.concatenate(weights, axis=1).astype(_MXU_DTYPE)   # (din, k*d)
    bias = jnp.concatenate(biases, axis=1)                    # (1,   k*d)
    return pl.pallas_call(
        _packed_proj_kernel,
        grid=(n // tm,),
        in_specs=[pl.BlockSpec((tm, din), lambda i: (i, 0)),
                  pl.BlockSpec((din, k * d), lambda i: (0, 0)),
                  pl.BlockSpec((1, k * d), lambda i: (0, 0))],
        out_specs=tuple(pl.BlockSpec((tm, d), lambda i: (i, 0)) for _ in range(k)),
        out_shape=tuple(jax.ShapeDtypeStruct((n, d), out_dtype) for _ in range(k)),
        compiler_params=_cparams("parallel"),
    )(x, w, bias)


def attention_fused(q, k, v, res, wo, bo, *, n_heads, tq):
    """q/k/v: (B, H, L{q,k}, dh) head-major; res: (B, Lq, d).

    Returns z = res + ctx @ Wo + bo (B, Lq, d), attn (B, H, Lq, Lk) and
    per-tile BN partial statistics (B*nq, 2, d)."""
    b, h, lq, dh = q.shape
    lk = k.shape[2]
    d = res.shape[-1]
    nq = lq // tq
    scale = 1.0 / (dh ** 0.5)
    wo3 = wo.reshape(n_heads, dh, d).astype(_MXU_DTYPE)   # rows grouped by head
    kern = functools.partial(_attn_fused_kernel, scale=scale)
    # TODO(synk): for very long Lk add flash-style tiling over the key axis.
    return pl.pallas_call(
        kern,
        grid=(b, nq),
        in_specs=[
            pl.BlockSpec((None, h, tq, dh), lambda bi, qi: (bi, 0, qi, 0)),
            pl.BlockSpec((None, h, lk, dh), lambda bi, qi: (bi, 0, 0, 0)),
            pl.BlockSpec((None, h, lk, dh), lambda bi, qi: (bi, 0, 0, 0)),
            pl.BlockSpec((None, tq, d), lambda bi, qi: (bi, qi, 0)),
            pl.BlockSpec((n_heads, dh, d), lambda bi, qi: (0, 0, 0)),
            pl.BlockSpec((1, d), lambda bi, qi: (0, 0)),
        ],
        out_specs=(
            pl.BlockSpec((None, tq, d), lambda bi, qi: (bi, qi, 0)),
            # (H, tq, Lk) block written straight into (B, H, L, Lk): lane-dense
            # whenever Lk >= 128 and no wrapper-side O(L^2) transpose needed.
            pl.BlockSpec((None, h, tq, lk), lambda bi, qi: (bi, 0, qi, 0)),
            pl.BlockSpec((None, 2, d), lambda bi, qi: (bi * nq + qi, 0, 0)),
        ),
        out_shape=(
            jax.ShapeDtypeStruct((b, lq, d), jnp.float32),
            # TODO(synk): O(L^2) attention-weight output is required by the
            # module's return signature; it dominates HBM traffic at long L.
            jax.ShapeDtypeStruct((b, n_heads, lq, lk), jnp.float32),
            jax.ShapeDtypeStruct((b * nq, 2, d), jnp.float32),
        ),
        compiler_params=_cparams("parallel", "parallel"),
    )(q, k, v, res, wo3, bo)


def bn_qproj(z, stats, gamma, beta, wq, bq, *, n_tokens, tm):
    n, d = z.shape
    kern = functools.partial(_bn_qproj_kernel, inv_n=1.0 / n_tokens)
    return pl.pallas_call(
        kern,
        grid=(n // tm,),
        in_specs=[
            pl.BlockSpec((tm, d), lambda i: (i, 0)),
            pl.BlockSpec((2, d), lambda i: (0, 0)),
            pl.BlockSpec((1, d), lambda i: (0, 0)),
            pl.BlockSpec((1, d), lambda i: (0, 0)),
            pl.BlockSpec((d, d), lambda i: (0, 0)),
            pl.BlockSpec((1, d), lambda i: (0, 0)),
        ],
        out_specs=(pl.BlockSpec((tm, d), lambda i: (i, 0)),
                   pl.BlockSpec((tm, d), lambda i: (i, 0))),
        out_shape=(jax.ShapeDtypeStruct((n, d), jnp.bfloat16),  # q for cross attn
                   jax.ShapeDtypeStruct((n, d), jnp.float32)),  # normalized x
        compiler_params=_cparams("parallel"),
    )(z, stats, gamma, beta, wq.astype(_MXU_DTYPE), bq)


def bn_ffn_residual_stats(z, stats, gamma, beta, w1, b1, w2, b2, *, n_tokens, tm):
    n, d = z.shape
    dff = w1.shape[1]
    nt = n // tm
    kern = functools.partial(_bn_ffn_kernel, inv_n=1.0 / n_tokens)
    return pl.pallas_call(
        kern,
        grid=(nt,),
        in_specs=[
            pl.BlockSpec((tm, d), lambda i: (i, 0)),
            pl.BlockSpec((2, d), lambda i: (0, 0)),
            pl.BlockSpec((1, d), lambda i: (0, 0)),
            pl.BlockSpec((1, d), lambda i: (0, 0)),
            pl.BlockSpec((d, dff), lambda i: (0, 0)),
            pl.BlockSpec((1, dff), lambda i: (0, 0)),
            pl.BlockSpec((dff, d), lambda i: (0, 0)),
            pl.BlockSpec((1, d), lambda i: (0, 0)),
        ],
        out_specs=(pl.BlockSpec((tm, d), lambda i: (i, 0)),
                   pl.BlockSpec((None, 2, d), lambda i: (i, 0, 0))),
        out_shape=(jax.ShapeDtypeStruct((n, d), jnp.float32),
                   jax.ShapeDtypeStruct((nt, 2, d), jnp.float32)),
        compiler_params=_cparams("parallel"),
    )(z, stats, gamma, beta,
      w1.astype(_MXU_DTYPE), b1, w2.astype(_MXU_DTYPE), b2)


def bn_apply(z, stats, gamma, beta, *, n_tokens, tm):
    n, d = z.shape
    kern = functools.partial(_bn_apply_kernel, inv_n=1.0 / n_tokens)
    return pl.pallas_call(
        kern,
        grid=(n // tm,),
        in_specs=[
            pl.BlockSpec((tm, d), lambda i: (i, 0)),
            pl.BlockSpec((2, d), lambda i: (0, 0)),
            pl.BlockSpec((1, d), lambda i: (0, 0)),
            pl.BlockSpec((1, d), lambda i: (0, 0)),
        ],
        out_specs=pl.BlockSpec((tm, d), lambda i: (i, 0)),
        out_shape=jax.ShapeDtypeStruct((n, d), jnp.float32),
        compiler_params=_cparams("parallel"),
    )(z, stats, gamma, beta)


# ------------------------- full DecoderLayer forward ------------------------

def decoder_layer_forward(x, cross, params, n_heads):
    """x: (B, L, d_model), cross: (B, S, d_model)."""
    b, l, d = x.shape
    _, s, _ = cross.shape
    n_x, n_c = b * l, b * s
    dh = d // n_heads
    tm_x = _choose_tile(n_x, 512)
    tm_c = _choose_tile(n_c, 512)
    tq = _choose_tile(l, 128)
    sa, ca = params["self_attn"], params["cross_attn"]

    xf = x.reshape(n_x, d)
    cf = cross.reshape(n_c, d)

    def head_major(t, length):
        # (B*len, d) -> (B, H, len, dh).  Reshape is free; the transpose is a
        # small O(B*len*d) XLA copy buying clean head-batched kernel layout.
        return t.reshape(b, length, n_heads, dh).transpose(0, 2, 1, 3)

    # ---- sublayer 1: z1 = x + SelfAttn(x);  BN1 statistics ----
    q, k, v = packed_proj(xf, [sa["wq"], sa["wk"], sa["wv"]],
                          [sa["bq"], sa["bk"], sa["bv"]],
                          tm=tm_x, out_dtype=jnp.bfloat16)
    z1, x_attn_w, stats1_p = attention_fused(
        head_major(q, l), head_major(k, l), head_major(v, l),
        x, sa["wo"], sa["bo"], n_heads=n_heads, tq=tq)
    stats1 = stats1_p.sum(axis=0)          # tiny XLA reduce of parallel partials

    # ---- sublayer 2: x1 = BN1(z1); z2 = x1 + CrossAttn(x1, cross); BN2 stats ----
    q_c, x1 = bn_qproj(z1.reshape(n_x, d), stats1,
                       params["bn1_gamma"], params["bn1_beta"],
                       ca["wq"], ca["bq"], n_tokens=n_x, tm=tm_x)
    k_c, v_c = packed_proj(cf, [ca["wk"], ca["wv"]], [ca["bk"], ca["bv"]],
                           tm=tm_c, out_dtype=jnp.bfloat16)
    z2, cross_attn_w, stats2_p = attention_fused(
        head_major(q_c, l), head_major(k_c, s), head_major(v_c, s),
        x1.reshape(b, l, d), ca["wo"], ca["bo"], n_heads=n_heads, tq=tq)
    stats2 = stats2_p.sum(axis=0)

    # ---- sublayer 3: x2 = BN2(z2); z3 = x2 + FFN(x2); out = BN3(z3) ----
    z3, stats3_p = bn_ffn_residual_stats(
        z2.reshape(n_x, d), stats2, params["bn2_gamma"], params["bn2_beta"],
        params["w1"], params["b1"], params["w2"], params["b2"],
        n_tokens=n_x, tm=tm_x)
    stats3 = stats3_p.sum(axis=0)
    out = bn_apply(z3, stats3, params["bn3_gamma"], params["bn3_beta"],
                   n_tokens=n_x, tm=tm_x)
    return out.reshape(b, l, d), x_attn_w, cross_attn_w


# ------------------------------ params & reference ---------------------------

def init_params(key, d_model, d_ff):
    def attn_params(k):
        ks = jax.random.split(k, 8)
        return {
            "wq": jax.random.normal(ks[0], (d_model, d_model), jnp.float32) * 0.02,
            "wk": jax.random.normal(ks[1], (d_model, d_model), jnp.float32) * 0.02,
            "wv": jax.random.normal(ks[2], (d_model, d_model), jnp.float32) * 0.02,
            "wo": jax.random.normal(ks[3], (d_model, d_model), jnp.float32) * 0.02,
            "bq": jax.random.normal(ks[4], (1, d_model), jnp.float32) * 0.02,
            "bk": jax.random.normal(ks[5], (1, d_model), jnp.float32) * 0.02,
            "bv": jax.random.normal(ks[6], (1, d_model), jnp.float32) * 0.02,
            "bo": jax.random.normal(ks[7], (1, d_model), jnp.float32) * 0.02,
        }

    k_self, k_cross, k_w1, k_b1, k_w2, k_b2 = jax.random.split(key, 6)
    return {
        "self_attn": attn_params(k_self),
        "cross_attn": attn_params(k_cross),
        # conv1: (d_ff, d_model, 1) stored transposed as (d_model, d_ff)
        "w1": jax.random.normal(k_w1, (d_model, d_ff), jnp.float32) * 0.02,
        "b1": jax.random.normal(k_b1, (1, d_ff), jnp.float32) * 0.02,
        # conv2: (d_model, d_ff, 1) stored transposed as (d_ff, d_model)
        "w2": jax.random.normal(k_w2, (d_ff, d_model), jnp.float32) * 0.02,
        "b2": jax.random.normal(k_b2, (1, d_model), jnp.float32) * 0.02,
        "bn1_gamma": jnp.ones((1, d_model), jnp.float32),
        "bn1_beta": jnp.zeros((1, d_model), jnp.float32),
        "bn2_gamma": jnp.ones((1, d_model), jnp.float32),
        "bn2_beta": jnp.zeros((1, d_model), jnp.float32),
        "bn3_gamma": jnp.ones((1, d_model), jnp.float32),
        "bn3_beta": jnp.zeros((1, d_model), jnp.float32),
    }


def _reference_forward(x, cross, params, n_heads):
    """Pure-JAX f32 reference with identical semantics (sanity check)."""
    b, l, d = x.shape
    n_x = b * l
    dh = d // n_heads
    scale = 1.0 / (dh ** 0.5)
    sa, ca = params["self_attn"], params["cross_attn"]

    def mha(q_in, kv_in, p):
        lq, lk = q_in.shape[1], kv_in.shape[1]
        q = (q_in.reshape(-1, d) @ p["wq"] + p["bq"]).reshape(b, lq, n_heads, dh)
        k = (kv_in.reshape(-1, d) @ p["wk"] + p["bk"]).reshape(b, lk, n_heads, dh)
        v = (kv_in.reshape(-1, d) @ p["wv"] + p["bv"]).reshape(b, lk, n_heads, dh)
        sc = jnp.einsum('bqhd,bkhd->bhqk', q, k) * scale
        a = jax.nn.softmax(sc, axis=-1)
        ctx = jnp.einsum('bhqk,bkhd->bqhd', a, v).reshape(b, lq, d)
        out = (ctx.reshape(-1, d) @ p["wo"] + p["bo"]).reshape(b, lq, d)
        return out, a

    def bn(z, gamma, beta):
        mean = jnp.mean(z, axis=0, keepdims=True)
        var = jnp.mean(z * z, axis=0, keepdims=True) - mean * mean
        return (z - mean) * (gamma * jax.lax.rsqrt(var + _EPS)) + beta

    xf = x.reshape(n_x, d)
    sa_out, x_a = mha(x, x, sa)
    x1 = bn(xf + sa_out.reshape(n_x, d), params["bn1_gamma"], params["bn1_beta"])
    ca_out, c_a = mha(x1.reshape(b, l, d), cross, ca)
    x2 = bn(x1 + ca_out.reshape(n_x, d), params["bn2_gamma"], params["bn2_beta"])
    h = jnp.maximum(x2 @ params["w1"] + params["b1"], 0.0)
    y = h @ params["w2"] + params["b2"]
    out = bn(x2 + y, params["bn3_gamma"], params["bn3_beta"])
    return out.reshape(b, l, d), x_a, c_a


# -------------------------------- main ---------------------------------------

if __name__ == "__main__":
    B, L, S = 2, 8, 12
    d_model, n_heads = 32, 4
    d_ff = 4 * d_model

    key = jax.random.PRNGKey(0)
    k_x, k_c, k_p = jax.random.split(key, 3)
    x = jax.random.normal(k_x, (B, L, d_model), jnp.float32)
    cross = jax.random.normal(k_c, (B, S, d_model), jnp.float32)
    params = init_params(k_p, d_model, d_ff)

    fwd = jax.jit(functools.partial(decoder_layer_forward, n_heads=n_heads))
    out, x_attn, cross_attn = fwd(x, cross, params)
    jax.block_until_ready((out, x_attn, cross_attn))

    assert out.shape == (B, L, d_model)
    assert x_attn.shape == (B, n_heads, L, L)
    assert cross_attn.shape == (B, n_heads, L, S)
    assert bool(jnp.all(jnp.isfinite(out)))

    ref_out, ref_xa, ref_ca = _reference_forward(x, cross, params, n_heads)
    assert bool(jnp.allclose(out, ref_out, rtol=2e-2, atol=2e-2)), \
        float(jnp.max(jnp.abs(out - ref_out)))
    assert bool(jnp.allclose(x_attn, ref_xa, rtol=2e-2, atol=2e-2))
    assert bool(jnp.allclose(cross_attn, ref_ca, rtol=2e-2, atol=2e-2))

    print("KERNEL_OK")
</pallas_src>

<mosaic_0001>
module attributes {stable_mosaic.version = 11 : i64} {
  func.func @_packed_proj_kernel(%arg0: i32, %arg1: memref<16x32xf32, #tpu.memory_space<vmem>>, %arg2: memref<32x96xbf16, #tpu.memory_space<vmem>>, %arg3: memref<1x96xf32, #tpu.memory_space<vmem>>, %arg4: memref<16x32xbf16, #tpu.memory_space<vmem>>, %arg5: memref<16x32xbf16, #tpu.memory_space<vmem>>, %arg6: memref<16x32xbf16, #tpu.memory_space<vmem>>) attributes {dimension_semantics = [#tpu.dimension_semantics<parallel>], iteration_bounds = array<i64: 1>, scalar_prefetch = 0 : i64, scratch_operands = 0 : i64, tpu.core_type = #tpu.core_type<tc>, window_params = [{transform_indices = @transform_0, window_bounds = array<i64: 16, 32>}, {pipeline_mode = #tpu.pipeline_mode<synchronous>, transform_indices = @transform_1, window_bounds = array<i64: 32, 96>}, {pipeline_mode = #tpu.pipeline_mode<synchronous>, transform_indices = @transform_2, window_bounds = array<i64: 1, 96>}, {transform_indices = @transform_3, window_bounds = array<i64: 16, 32>}, {transform_indices = @transform_4, window_bounds = array<i64: 16, 32>}, {transform_indices = @transform_5, window_bounds = array<i64: 16, 32>}]} {
    %c0 = arith.constant 0 : index
    %c0_0 = arith.constant 0 : index
    %0 = vector.load %arg1[%c0, %c0_0] : memref<16x32xf32, #tpu.memory_space<vmem>>, vector<16x32xf32>
    %1 = arith.truncf %0 : vector<16x32xf32> to vector<16x32xbf16>
    %c0_1 = arith.constant 0 : index
    %c0_2 = arith.constant 0 : index
    %2 = vector.load %arg2[%c0_1, %c0_2] : memref<32x96xbf16, #tpu.memory_space<vmem>>, vector<32x96xbf16>
    %cst = arith.constant dense<0.000000e+00> : vector<16x96xf32>
    %3 = tpu.matmul %1, %2, %cst {dimension_numbers = #tpu.dot_dimension_numbers<[1], [0], [0], [1], [0, 0, 1, 1], [], []>} : vector<16x32xbf16>, vector<32x96xbf16>, vector<16x96xf32> -> vector<16x96xf32>
    %c0_3 = arith.constant 0 : index
    %c0_4 = arith.constant 0 : index
    %4 = vector.load %arg3[%c0_3, %c0_4] : memref<1x96xf32, #tpu.memory_space<vmem>>, vector<1x96xf32>
    %5 = vector.broadcast %4 : vector<1x96xf32> to vector<16x96xf32>
    %6 = arith.addf %3, %5 : vector<16x96xf32>
    %7 = vector.extract_strided_slice %6 {offsets = [0, 0], sizes = [16, 32], strides = [1, 1]} : vector<16x96xf32> to vector<16x32xf32>
    %8 = arith.truncf %7 : vector<16x32xf32> to vector<16x32xbf16>
    %c0_5 = arith.constant 0 : index
    %c0_6 = arith.constant 0 : index
    %9 = vector.load %arg4[%c0_5, %c0_6] : memref<16x32xbf16, #tpu.memory_space<vmem>>, vector<16x32xbf16>
    tpu.vector_store %arg4[%c0_5, %c0_6], %8 {strides = array<i32>} : memref<16x32xbf16, #tpu.memory_space<vmem>>, vector<16x32xbf16>,
    %10 = vector.extract_strided_slice %6 {offsets = [0, 32], sizes = [16, 32], strides = [1, 1]} : vector<16x96xf32> to vector<16x32xf32>
    %11 = arith.truncf %10 : vector<16x32xf32> to vector<16x32xbf16>
    %c0_7 = arith.constant 0 : index
    %c0_8 = arith.constant 0 : index
    %12 = vector.load %arg5[%c0_7, %c0_8] : memref<16x32xbf16, #tpu.memory_space<vmem>>, vector<16x32xbf16>
    tpu.vector_store %arg5[%c0_7, %c0_8], %11 {strides = array<i32>} : memref<16x32xbf16, #tpu.memory_space<vmem>>, vector<16x32xbf16>,
    %13 = vector.extract_strided_slice %6 {offsets = [0, 64], sizes = [16, 32], strides = [1, 1]} : vector<16x96xf32> to vector<16x32xf32>
    %14 = arith.truncf %13 : vector<16x32xf32> to vector<16x32xbf16>
    %c0_9 = arith.constant 0 : index
    %c0_10 = arith.constant 0 : index
    %15 = vector.load %arg6[%c0_9, %c0_10] : memref<16x32xbf16, #tpu.memory_space<vmem>>, vector<16x32xbf16>
    tpu.vector_store %arg6[%c0_9, %c0_10], %14 {strides = array<i32>} : memref<16x32xbf16, #tpu.memory_space<vmem>>, vector<16x32xbf16>,
    return
  }
  func.func @transform_0(%arg0: i32) -> (i32, i32) {
    %c0_i32 = arith.constant 0 : i32
    %c0_i32_0 = arith.constant 0 : i32
    return %arg0, %c0_i32 : i32, i32
  }
  func.func @transform_1(%arg0: i32) -> (i32, i32) {
    %c0_i32 = arith.constant 0 : i32
    %c0_i32_0 = arith.constant 0 : i32
    %c0_i32_1 = arith.constant 0 : i32
    return %c0_i32, %c0_i32_0 : i32, i32
  }
  func.func @transform_2(%arg0: i32) -> (i32, i32) {
    %c0_i32 = arith.constant 0 : i32
    %c0_i32_0 = arith.constant 0 : i32
    %c0_i32_1 = arith.constant 0 : i32
    return %c0_i32, %c0_i32_0 : i32, i32
  }
  func.func @transform_3(%arg0: i32) -> (i32, i32) {
    %c0_i32 = arith.constant 0 : i32
    %c0_i32_0 = arith.constant 0 : i32
    return %arg0, %c0_i32 : i32, i32
  }
  func.func @transform_4(%arg0: i32) -> (i32, i32) {
    %c0_i32 = arith.constant 0 : i32
    %c0_i32_0 = arith.constant 0 : i32
    return %arg0, %c0_i32 : i32, i32
  }
  func.func @transform_5(%arg0: i32) -> (i32, i32) {
    %c0_i32 = arith.constant 0 : i32
    %c0_i32_0 = arith.constant 0 : i32
    return %arg0, %c0_i32 : i32, i32
  }
}

module attributes {stable_mosaic.version = 11 : i64} {
  func.func @_bn_qproj_kernel(%arg0: i32, %arg1: memref<16x32xf32, #tpu.memory_space<vmem>>, %arg2: memref<2x32xf32, #tpu.memory_space<vmem>>, %arg3: memref<1x32xf32, #tpu.memory_space<vmem>>, %arg4: memref<1x32xf32, #tpu.memory_space<vmem>>, %arg5: memref<32x32xbf16, #tpu.memory_space<vmem>>, %arg6: memref<1x32xf32, #tpu.memory_space<vmem>>, %arg7: memref<16x32xbf16, #tpu.memory_space<vmem>>, %arg8: memref<16x32xf32, #tpu.memory_space<vmem>>) attributes {dimension_semantics = [#tpu.dimension_semantics<parallel>], iteration_bounds = array<i64: 1>, scalar_prefetch = 0 : i64, scratch_operands = 0 : i64, tpu.core_type = #tpu.core_type<tc>, window_params = [{transform_indices = @transform_0, window_bounds = array<i64: 16, 32>}, {pipeline_mode = #tpu.pipeline_mode<synchronous>, transform_indices = @transform_1, window_bounds = array<i64: 2, 32>}, {pipeline_mode = #tpu.pipeline_mode<synchronous>, transform_indices = @transform_2, window_bounds = array<i64: 1, 32>}, {pipeline_mode = #tpu.pipeline_mode<synchronous>, transform_indices = @transform_3, window_bounds = array<i64: 1, 32>}, {pipeline_mode = #tpu.pipeline_mode<synchronous>, transform_indices = @transform_4, window_bounds = array<i64: 32, 32>}, {pipeline_mode = #tpu.pipeline_mode<synchronous>, transform_indices = @transform_5, window_bounds = array<i64: 1, 32>}, {transform_indices = @transform_6, window_bounds = array<i64: 16, 32>}, {transform_indices = @transform_7, window_bounds = array<i64: 16, 32>}]} {
    %c0 = arith.constant 0 : index
    %c0_0 = arith.constant 0 : index
    %0 = vector.load %arg1[%c0, %c0_0] : memref<16x32xf32, #tpu.memory_space<vmem>>, vector<16x32xf32>
    %c0_1 = arith.constant 0 : index
    %c0_2 = arith.constant 0 : index
    %1 = vector.load %arg2[%c0_1, %c0_2] : memref<2x32xf32, #tpu.memory_space<vmem>>, vector<2x32xf32>
    %c0_3 = arith.constant 0 : index
    %c0_4 = arith.constant 0 : index
    %2 = vector.load %arg3[%c0_3, %c0_4] : memref<1x32xf32, #tpu.memory_space<vmem>>, vector<1x32xf32>
    %c0_5 = arith.constant 0 : index
    %c0_6 = arith.constant 0 : index
    %3 = vector.load %arg4[%c0_5, %c0_6] : memref<1x32xf32, #tpu.memory_space<vmem>>, vector<1x32xf32>
    %4 = vector.extract_strided_slice %1 {offsets = [0, 0], sizes = [1, 32], strides = [1, 1]} : vector<2x32xf32> to vector<1x32xf32>
    %cst = arith.constant 6.250000e-02 : f32
    %5 = vector.broadcast %cst : f32 to vector<1x32xf32>
    %6 = arith.mulf %4, %5 : vector<1x32xf32>
    %7 = vector.extract_strided_slice %1 {offsets = [1, 0], sizes = [1, 32], strides = [1, 1]} : vector<2x32xf32> to vector<1x32xf32>
    %cst_7 = arith.constant 6.250000e-02 : f32
    %8 = vector.broadcast %cst_7 : f32 to vector<1x32xf32>
    %9 = arith.mulf %7, %8 : vector<1x32xf32>
    %10 = arith.mulf %6, %6 : vector<1x32xf32>
    %11 = arith.subf %9, %10 : vector<1x32xf32>
    %12 = vector.broadcast %6 : vector<1x32xf32> to vector<16x32xf32>
    %13 = arith.subf %0, %12 : vector<16x32xf32>
    %cst_8 = arith.constant 9.99999974E-6 : f32
    %14 = vector.broadcast %cst_8 : f32 to vector<1x32xf32>
    %15 = arith.addf %11, %14 : vector<1x32xf32>
    %16 = math.rsqrt %15 : vector<1x32xf32>
    %17 = arith.mulf %2, %16 : vector<1x32xf32>
    %18 = vector.broadcast %17 : vector<1x32xf32> to vector<16x32xf32>
    %19 = arith.mulf %13, %18 : vector<16x32xf32>
    %20 = vector.broadcast %3 : vector<1x32xf32> to vector<16x32xf32>
    %21 = arith.addf %19, %20 : vector<16x32xf32>
    %c0_9 = arith.constant 0 : index
    %c0_10 = arith.constant 0 : index
    %22 = vector.load %arg8[%c0_9, %c0_10] : memref<16x32xf32, #tpu.memory_space<vmem>>, vector<16x32xf32>
    tpu.vector_store %arg8[%c0_9, %c0_10], %21 {strides = array<i32>} : memref<16x32xf32, #tpu.memory_space<vmem>>, vector<16x32xf32>,
    %23 = arith.truncf %21 : vector<16x32xf32> to vector<16x32xbf16>
    %c0_11 = arith.constant 0 : index
    %c0_12 = arith.constant 0 : index
    %24 = vector.load %arg5[%c0_11, %c0_12] : memref<32x32xbf16, #tpu.memory_space<vmem>>, vector<32x32xbf16>
    %cst_13 = arith.constant dense<0.000000e+00> : vector<16x32xf32>
    %25 = tpu.matmul %23, %24, %cst_13 {dimension_numbers = #tpu.dot_dimension_numbers<[1], [0], [0], [1], [0, 0, 1, 1], [], []>} : vector<16x32xbf16>, vector<32x32xbf16>, vector<16x32xf32> -> vector<16x32xf32>
    %c0_14 = arith.constant 0 : index
    %c0_15 = arith.constant 0 : index
    %26 = vector.load %arg6[%c0_14, %c0_15] : memref<1x32xf32, #tpu.memory_space<vmem>>, vector<1x32xf32>
    %27 = vector.broadcast %26 : vector<1x32xf32> to vector<16x32xf32>
    %28 = arith.addf %25, %27 : vector<16x32xf32>
    %29 = arith.truncf %28 : vector<16x32xf32> to vector<16x32xbf16>
    %c0_16 = arith.constant 0 : index
    %c0_17 = arith.constant 0 : index
    %30 = vector.load %arg7[%c0_16, %c0_17] : memref<16x32xbf16, #tpu.memory_space<vmem>>, vector<16x32xbf16>
    tpu.vector_store %arg7[%c0_16, %c0_17], %29 {strides = array<i32>} : memref<16x32xbf16, #tpu.memory_space<vmem>>, vector<16x32xbf16>,
    return
  }
  func.func @transform_0(%arg0: i32) -> (i32, i32) {
    %c0_i32 = arith.constant 0 : i32
    %c0_i32_0 = arith.constant 0 : i32
    return %arg0, %c0_i32 : i32, i32
  }
  func.func @transform_1(%arg0: i32) -> (i32, i32) {
    %c0_i32 = arith.constant 0 : i32
    %c0_i32_0 = arith.constant 0 : i32
    %c0_i32_1 = arith.constant 0 : i32
    return %c0_i32, %c0_i32_0 : i32, i32
  }
  func.func @transform_2(%arg0: i32) -> (i32, i32) {
    %c0_i32 = arith.constant 0 : i32
    %c0_i32_0 = arith.constant 0 : i32
    %c0_i32_1 = arith.constant 0 : i32
    return %c0_i32, %c0_i32_0 : i32, i32
  }
  func.func @transform_3(%arg0: i32) -> (i32, i32) {
    %c0_i32 = arith.constant 0 : i32
    %c0_i32_0 = arith.constant 0 : i32
    %c0_i32_1 = arith.constant 0 : i32
    return %c0_i32, %c0_i32_0 : i32, i32
  }
  func.func @transform_4(%arg0: i32) -> (i32, i32) {
    %c0_i32 = arith.constant 0 : i32
    %c0_i32_0 = arith.constant 0 : i32
    %c0_i32_1 = arith.constant 0 : i32
    return %c0_i32, %c0_i32_0 : i32, i32
  }
  func.func @transform_5(%arg0: i32) -> (i32, i32) {
    %c0_i32 = arith.constant 0 : i32
    %c0_i32_0 = arith.constant 0 : i32
    %c0_i32_1 = arith.constant 0 : i32
    return %c0_i32, %c0_i32_0 : i32, i32
  }
  func.func @transform_6(%arg0: i32) -> (i32, i32) {
    %c0_i32 = arith.constant 0 : i32
    %c0_i32_0 = arith.constant 0 : i32
    return %arg0, %c0_i32 : i32, i32
  }
  func.func @transform_7(%arg0: i32) -> (i32, i32) {
    %c0_i32 = arith.constant 0 : i32
    %c0_i32_0 = arith.constant 0 : i32
    return %arg0, %c0_i32 : i32, i32
  }
}

module attributes {stable_mosaic.version = 11 : i64} {
  func.func @_attn_fused_kernel(%arg0: i32, %arg1: i32, %arg2: memref<1x4x8x8xbf16, #tpu.memory_space<vmem>>, %arg3: memref<1x4x8x8xbf16, #tpu.memory_space<vmem>>, %arg4: memref<1x4x8x8xbf16, #tpu.memory_space<vmem>>, %arg5: memref<1x8x32xf32, #tpu.memory_space<vmem>>, %arg6: memref<4x8x32xbf16, #tpu.memory_space<vmem>>, %arg7: memref<1x32xf32, #tpu.memory_space<vmem>>, %arg8: memref<1x8x32xf32, #tpu.memory_space<vmem>>, %arg9: memref<1x4x8x8xf32, #tpu.memory_space<vmem>>, %arg10: memref<1x2x32xf32, #tpu.memory_space<vmem>>) attributes {dimension_semantics = [#tpu.dimension_semantics<parallel>, #tpu.dimension_semantics<parallel>], iteration_bounds = array<i64: 2, 1>, scalar_prefetch = 0 : i64, scratch_operands = 0 : i64, tpu.core_type = #tpu.core_type<tc>, window_params = [{transform_indices = @transform_0, window_bounds = array<i64: 1, 4, 8, 8>}, {transform_indices = @transform_1, window_bounds = array<i64: 1, 4, 8, 8>}, {transform_indices = @transform_2, window_bounds = array<i64: 1, 4, 8, 8>}, {transform_indices = @transform_3, window_bounds = array<i64: 1, 8, 32>}, {pipeline_mode = #tpu.pipeline_mode<synchronous>, transform_indices = @transform_4, window_bounds = array<i64: 4, 8, 32>}, {pipeline_mode = #tpu.pipeline_mode<synchronous>, transform_indices = @transform_5, window_bounds = array<i64: 1, 32>}, {transform_indices = @transform_6, window_bounds = array<i64: 1, 8, 32>}, {transform_indices = @transform_7, window_bounds = array<i64: 1, 4, 8, 8>}, {transform_indices = @transform_8, window_bounds = array<i64: 1, 2, 32>}]} {
    %c0 = arith.constant 0 : index
    %c0_0 = arith.constant 0 : index
    %c0_1 = arith.constant 0 : index
    %c0_2 = arith.constant 0 : index
    %0 = vector.load %arg2[%c0, %c0_0, %c0_1, %c0_2] : memref<1x4x8x8xbf16, #tpu.memory_space<vmem>>, vector<1x4x8x8xbf16>
    %1 = vector.shape_cast %0 : vector<1x4x8x8xbf16> to vector<4x8x8xbf16>
    %2 = arith.extf %1 : vector<4x8x8xbf16> to vector<4x8x8xf32>
    %cst = arith.constant 0.353553385 : f32
    %3 = vector.broadcast %cst : f32 to vector<4x8x8xf32>
    %4 = arith.mulf %2, %3 : vector<4x8x8xf32>
    %5 = arith.truncf %4 : vector<4x8x8xf32> to vector<4x8x8xbf16>
    %c0_3 = arith.constant 0 : index
    %c0_4 = arith.constant 0 : index
    %c0_5 = arith.constant 0 : index
    %c0_6 = arith.constant 0 : index
    %6 = vector.load %arg3[%c0_3, %c0_4, %c0_5, %c0_6] : memref<1x4x8x8xbf16, #tpu.memory_space<vmem>>, vector<1x4x8x8xbf16>
    %7 = vector.shape_cast %6 : vector<1x4x8x8xbf16> to vector<4x8x8xbf16>
    "tpu.trace_start"() <{level = 10 : i32, message = "hqd,hkd->hqk"}> : () -> ()
    %cst_7 = arith.constant dense<0.000000e+00> : vector<4x8x8xf32>
    %8 = tpu.matmul %5, %7, %cst_7 {dimension_numbers = #tpu.dot_dimension_numbers<[2], [2], [1], [1], [0, 0, 0, 1, 1, 1], [0], [0]>} : vector<4x8x8xbf16>, vector<4x8x8xbf16>, vector<4x8x8xf32> -> vector<4x8x8xf32>
    "tpu.trace_stop"() : () -> ()
    %cst_8 = arith.constant dense<0xFF800000> : vector<4x8xf32>
    %9 = vector.multi_reduction <maximumf>, %8, %cst_8 [2] : vector<4x8x8xf32> to vector<4x8xf32>
    %10 = vector.shape_cast %9 : vector<4x8xf32> to vector<4x8x1xf32>
    %11 = vector.broadcast %10 : vector<4x8x1xf32> to vector<4x8x8xf32>
    %12 = arith.subf %8, %11 : vector<4x8x8xf32>
    %13 = math.exp %12 : vector<4x8x8xf32>
    %cst_9 = arith.constant dense<0.000000e+00> : vector<4x8xf32>
    %14 = vector.multi_reduction <add>, %13, %cst_9 [2] : vector<4x8x8xf32> to vector<4x8xf32>
    %15 = vector.shape_cast %14 : vector<4x8xf32> to vector<4x8x1xf32>
    %cst_10 = arith.constant 1.000000e+00 : f32
    %16 = vector.broadcast %cst_10 : f32 to vector<4x8x1xf32>
    %17 = arith.divf %16, %15 : vector<4x8x1xf32>
    %18 = vector.broadcast %17 : vector<4x8x1xf32> to vector<4x8x8xf32>
    %19 = arith.mulf %13, %18 : vector<4x8x8xf32>
    %c0_11 = arith.constant 0 : index
    %c0_12 = arith.constant 0 : index
    %c0_13 = arith.constant 0 : index
    %c0_14 = arith.constant 0 : index
    %20 = vector.load %arg9[%c0_11, %c0_12, %c0_13, %c0_14] : memref<1x4x8x8xf32, #tpu.memory_space<vmem>>, vector<1x4x8x8xf32>
    %21 = vector.shape_cast %20 : vector<1x4x8x8xf32> to vector<4x8x8xf32>
    %22 = vector.shape_cast %19 : vector<4x8x8xf32> to vector<1x4x8x8xf32>
    tpu.vector_store %arg9[%c0_11, %c0_12, %c0_13, %c0_14], %22 {strides = array<i32>} : memref<1x4x8x8xf32, #tpu.memory_space<vmem>>, vector<1x4x8x8xf32>,
    %23 = arith.truncf %19 : vector<4x8x8xf32> to vector<4x8x8xbf16>
    %c0_15 = arith.constant 0 : index
    %c0_16 = arith.constant 0 : index
    %c0_17 = arith.constant 0 : index
    %c0_18 = arith.constant 0 : index
    %24 = vector.load %arg4[%c0_15, %c0_16, %c0_17, %c0_18] : memref<1x4x8x8xbf16, #tpu.memory_space<vmem>>, vector<1x4x8x8xbf16>
    %25 = vector.shape_cast %24 : vector<1x4x8x8xbf16> to vector<4x8x8xbf16>
    "tpu.trace_start"() <{level = 10 : i32, message = "hqk,hkd->hqd"}> : () -> ()
    %cst_19 = arith.constant dense<0.000000e+00> : vector<4x8x8xf32>
    %26 = tpu.matmul %23, %25, %cst_19 {dimension_numbers = #tpu.dot_dimension_numbers<[2], [1], [1], [2], [0, 0, 0, 1, 1, 2], [0], [0]>} : vector<4x8x8xbf16>, vector<4x8x8xbf16>, vector<4x8x8xf32> -> vector<4x8x8xf32>
    "tpu.trace_stop"() : () -> ()
    %c0_20 = arith.constant 0 : index
    %c0_21 = arith.constant 0 : index
    %c0_22 = arith.constant 0 : index
    %27 = vector.load %arg5[%c0_20, %c0_21, %c0_22] : memref<1x8x32xf32, #tpu.memory_space<vmem>>, vector<1x8x32xf32>
    %28 = vector.shape_cast %27 : vector<1x8x32xf32> to vector<8x32xf32>
    %c0_23 = arith.constant 0 : index
    %c0_24 = arith.constant 0 : index
    %29 = vector.load %arg7[%c0_23, %c0_24] : memref<1x32xf32, #tpu.memory_space<vmem>>, vector<1x32xf32>
    %30 = vector.broadcast %29 : vector<1x32xf32> to vector<8x32xf32>
    %31 = arith.addf %28, %30 : vector<8x32xf32>
    %32 = vector.extract_strided_slice %26 {offsets = [0, 0, 0], sizes = [1, 8, 8], strides = [1, 1, 1]} : vector<4x8x8xf32> to vector<1x8x8xf32>
    %33 = vector.shape_cast %32 : vector<1x8x8xf32> to vector<8x8xf32>
    %34 = arith.truncf %33 : vector<8x8xf32> to vector<8x8xbf16>
    %c0_25 = arith.constant 0 : index
    %c0_26 = arith.constant 0 : index
    %c0_27 = arith.constant 0 : index
    %35 = vector.load %arg6[%c0_25, %c0_26, %c0_27] : memref<4x8x32xbf16, #tpu.memory_space<vmem>>, vector<1x8x32xbf16>
    %36 = vector.shape_cast %35 : vector<1x8x32xbf16> to vector<8x32xbf16>
    %cst_28 = arith.constant dense<0.000000e+00> : vector<8x32xf32>
    %37 = tpu.matmul %34, %36, %cst_28 {dimension_numbers = #tpu.dot_dimension_numbers<[1], [0], [0], [1], [0, 0, 1, 1], [], []>} : vector<8x8xbf16>, vector<8x32xbf16>, vector<8x32xf32> -> vector<8x32xf32>
    %38 = arith.addf %31, %37 : vector<8x32xf32>
    %39 = vector.extract_strided_slice %26 {offsets = [1, 0, 0], sizes = [1, 8, 8], strides = [1, 1, 1]} : vector<4x8x8xf32> to vector<1x8x8xf32>
    %40 = vector.shape_cast %39 : vector<1x8x8xf32> to vector<8x8xf32>
    %41 = arith.truncf %40 : vector<8x8xf32> to vector<8x8xbf16>
    %c1 = arith.constant 1 : index
    %c0_29 = arith.constant 0 : index
    %c0_30 = arith.constant 0 : index
    %42 = vector.load %arg6[%c1, %c0_29, %c0_30] : memref<4x8x32xbf16, #tpu.memory_space<vmem>>, vector<1x8x32xbf16>
    %43 = vector.shape_cast %42 : vector<1x8x32xbf16> to vector<8x32xbf16>
    %cst_31 = arith.constant dense<0.000000e+00> : vector<8x32xf32>
    %44 = tpu.matmul %41, %43, %cst_31 {dimension_numbers = #tpu.dot_dimension_numbers<[1], [0], [0], [1], [0, 0, 1, 1], [], []>} : vector<8x8xbf16>, vector<8x32xbf16>, vector<8x32xf32> -> vector<8x32xf32>
    %45 = arith.addf %38, %44 : vector<8x32xf32>
    %46 = vector.extract_strided_slice %26 {offsets = [2, 0, 0], sizes = [1, 8, 8], strides = [1, 1, 1]} : vector<4x8x8xf32> to vector<1x8x8xf32>
    %47 = vector.shape_cast %46 : vector<1x8x8xf32> to vector<8x8xf32>
    %48 = arith.truncf %47 : vector<8x8xf32> to vector<8x8xbf16>
    %c2 = arith.constant 2 : index
    %c0_32 = arith.constant 0 : index
    %c0_33 = arith.constant 0 : index
    %49 = vector.load %arg6[%c2, %c0_32, %c0_33] : memref<4x8x32xbf16, #tpu.memory_space<vmem>>, vector<1x8x32xbf16>
    %50 = vector.shape_cast %49 : vector<1x8x32xbf16> to vector<8x32xbf16>
    %cst_34 = arith.constant dense<0.000000e+00> : vector<8x32xf32>
    %51 = tpu.matmul %48, %50, %cst_34 {dimension_numbers = #tpu.dot_dimension_numbers<[1], [0], [0], [1], [0, 0, 1, 1], [], []>} : vector<8x8xbf16>, vector<8x32xbf16>, vector<8x32xf32> -> vector<8x32xf32>
    %52 = arith.addf %45, %51 : vector<8x32xf32>
    %53 = vector.extract_strided_slice %26 {offsets = [3, 0, 0], sizes = [1, 8, 8], strides = [1, 1, 1]} : vector<4x8x8xf32> to vector<1x8x8xf32>
    %54 = vector.shape_cast %53 : vector<1x8x8xf32> to vector<8x8xf32>
    %55 = arith.truncf %54 : vector<8x8xf32> to vector<8x8xbf16>
    %c3 = arith.constant 3 : index
    %c0_35 = arith.constant 0 : index
    %c0_36 = arith.constant 0 : index
    %56 = vector.load %arg6[%c3, %c0_35, %c0_36] : memref<4x8x32xbf16, #tpu.memory_space<vmem>>, vector<1x8x32xbf16>
    %57 = vector.shape_cast %56 : vector<1x8x32xbf16> to vector<8x32xbf16>
    %cst_37 = arith.constant dense<0.000000e+00> : vector<8x32xf32>
    %58 = tpu.matmul %55, %57, %cst_37 {dimension_numbers = #tpu.dot_dimension_numbers<[1], [0], [0], [1], [0, 0, 1, 1], [], []>} : vector<8x8xbf16>, vector<8x32xbf16>, vector<8x32xf32> -> vector<8x32xf32>
    %59 = arith.addf %52, %58 : vector<8x32xf32>
    %c0_38 = arith.constant 0 : index
    %c0_39 = arith.constant 0 : index
    %c0_40 = arith.constant 0 : index
    %60 = vector.load %arg8[%c0_38, %c0_39, %c0_40] : memref<1x8x32xf32, #tpu.memory_space<vmem>>, vector<1x8x32xf32>
    %61 = vector.shape_cast %60 : vector<1x8x32xf32> to vector<8x32xf32>
    %62 = vector.shape_cast %59 : vector<8x32xf32> to vector<1x8x32xf32>
    tpu.vector_store %arg8[%c0_38, %c0_39, %c0_40], %62 {strides = array<i32>} : memref<1x8x32xf32, #tpu.memory_space<vmem>>, vector<1x8x32xf32>,
    %cst_41 = arith.constant dense<0.000000e+00> : vector<32xf32>
    %63 = vector.multi_reduction <add>, %59, %cst_41 [0] : vector<8x32xf32> to vector<32xf32>
    %64 = vector.shape_cast %63 : vector<32xf32> to vector<1x32xf32>
    %c0_42 = arith.constant 0 : index
    %c0_43 = arith.constant 0 : index
    %c0_44 = arith.constant 0 : index
    %65 = vector.load %arg10[%c0_42, %c0_43, %c0_44] : memref<1x2x32xf32, #tpu.memory_space<vmem>>, vector<1x1x32xf32>
    %66 = vector.shape_cast %65 : vector<1x1x32xf32> to vector<1x32xf32>
    %67 = vector.shape_cast %64 : vector<1x32xf32> to vector<1x1x32xf32>
    tpu.vector_store %arg10[%c0_42, %c0_43, %c0_44], %67 {strides = array<i32>} : memref<1x2x32xf32, #tpu.memory_space<vmem>>, vector<1x1x32xf32>,
    %68 = arith.mulf %59, %59 : vector<8x32xf32>
    %cst_45 = arith.constant dense<0.000000e+00> : vector<32xf32>
    %69 = vector.multi_reduction <add>, %68, %cst_45 [0] : vector<8x32xf32> to vector<32xf32>
    %70 = vector.shape_cast %69 : vector<32xf32> to vector<1x32xf32>
    %c0_46 = arith.constant 0 : index
    %c1_47 = arith.constant 1 : index
    %c0_48 = arith.constant 0 : index
    %71 = vector.load %arg10[%c0_46, %c1_47, %c0_48] : memref<1x2x32xf32, #tpu.memory_space<vmem>>, vector<1x1x32xf32>
    %72 = vector.shape_cast %71 : vector<1x1x32xf32> to vector<1x32xf32>
    %73 = vector.shape_cast %70 : vector<1x32xf32> to vector<1x1x32xf32>
    tpu.vector_store %arg10[%c0_46, %c1_47, %c0_48], %73 {strides = array<i32>} : memref<1x2x32xf32, #tpu.memory_space<vmem>>, vector<1x1x32xf32>,
    return
  }
  func.func @transform_0(%arg0: i32, %arg1: i32) -> (i32, i32, i32, i32) {
    %c0_i32 = arith.constant 0 : i32
    %c0_i32_0 = arith.constant 0 : i32
    %c0_i32_1 = arith.constant 0 : i32
    return %arg0, %c0_i32, %arg1, %c0_i32_0 : i32, i32, i32, i32
  }
  func.func @transform_1(%arg0: i32, %arg1: i32) -> (i32, i32, i32, i32) {
    %c0_i32 = arith.constant 0 : i32
    %c0_i32_0 = arith.constant 0 : i32
    %c0_i32_1 = arith.constant 0 : i32
    %c0_i32_2 = arith.constant 0 : i32
    return %arg0, %c0_i32, %c0_i32_0, %c0_i32_1 : i32, i32, i32, i32
  }
  func.func @transform_2(%arg0: i32, %arg1: i32) -> (i32, i32, i32, i32) {
    %c0_i32 = arith.constant 0 : i32
    %c0_i32_0 = arith.constant 0 : i32
    %c0_i32_1 = arith.constant 0 : i32
    %c0_i32_2 = arith.constant 0 : i32
    return %arg0, %c0_i32, %c0_i32_0, %c0_i32_1 : i32, i32, i32, i32
  }
  func.func @transform_3(%arg0: i32, %arg1: i32) -> (i32, i32, i32) {
    %c0_i32 = arith.constant 0 : i32
    %c0_i32_0 = arith.constant 0 : i32
    return %arg0, %arg1, %c0_i32 : i32, i32, i32
  }
  func.func @transform_4(%arg0: i32, %arg1: i32) -> (i32, i32, i32) {
    %c0_i32 = arith.constant 0 : i32
    %c0_i32_0 = arith.constant 0 : i32
    %c0_i32_1 = arith.constant 0 : i32
    %c0_i32_2 = arith.constant 0 : i32
    return %c0_i32, %c0_i32_0, %c0_i32_1 : i32, i32, i32
  }
  func.func @transform_5(%arg0: i32, %arg1: i32) -> (i32, i32) {
    %c0_i32 = arith.constant 0 : i32
    %c0_i32_0 = arith.constant 0 : i32
    %c0_i32_1 = arith.constant 0 : i32
    return %c0_i32, %c0_i32_0 : i32, i32
  }
  func.func @transform_6(%arg0: i32, %arg1: i32) -> (i32, i32, i32) {
    %c0_i32 = arith.constant 0 : i32
    %c0_i32_0 = arith.constant 0 : i32
    return %arg0, %arg1, %c0_i32 : i32, i32, i32
  }
  func.func @transform_7(%arg0: i32, %arg1: i32) -> (i32, i32, i32, i32) {
    %c0_i32 = arith.constant 0 : i32
    %c0_i32_0 = arith.constant 0 : i32
    %c0_i32_1 = arith.constant 0 : i32
    return %arg0, %c0_i32, %arg1, %c0_i32_0 : i32, i32, i32, i32
  }
  func.func @transform_8(%arg0: i32, %arg1: i32) -> (i32, i32, i32) {
    %c1_i32 = arith.constant 1 : i32
    %0 = arith.muli %arg0, %c1_i32 : i32
    %1 = arith.addi %0, %arg1 : i32
    %c0_i32 = arith.constant 0 : i32
    %c0_i32_0 = arith.constant 0 : i32
    %c0_i32_1 = arith.constant 0 : i32
    return %1, %c0_i32, %c0_i32_0 : i32, i32, i32
  }
}

module attributes {stable_mosaic.version = 11 : i64} {
  func.func @_packed_proj_kernel(%arg0: i32, %arg1: memref<24x32xf32, #tpu.memory_space<vmem>>, %arg2: memref<32x64xbf16, #tpu.memory_space<vmem>>, %arg3: memref<1x64xf32, #tpu.memory_space<vmem>>, %arg4: memref<24x32xbf16, #tpu.memory_space<vmem>>, %arg5: memref<24x32xbf16, #tpu.memory_space<vmem>>) attributes {dimension_semantics = [#tpu.dimension_semantics<parallel>], iteration_bounds = array<i64: 1>, scalar_prefetch = 0 : i64, scratch_operands = 0 : i64, tpu.core_type = #tpu.core_type<tc>, window_params = [{transform_indices = @transform_0, window_bounds = array<i64: 24, 32>}, {pipeline_mode = #tpu.pipeline_mode<synchronous>, transform_indices = @transform_1, window_bounds = array<i64: 32, 64>}, {pipeline_mode = #tpu.pipeline_mode<synchronous>, transform_indices = @transform_2, window_bounds = array<i64: 1, 64>}, {transform_indices = @transform_3, window_bounds = array<i64: 24, 32>}, {transform_indices = @transform_4, window_bounds = array<i64: 24, 32>}]} {
    %c0 = arith.constant 0 : index
    %c0_0 = arith.constant 0 : index
    %0 = vector.load %arg1[%c0, %c0_0] : memref<24x32xf32, #tpu.memory_space<vmem>>, vector<24x32xf32>
    %1 = arith.truncf %0 : vector<24x32xf32> to vector<24x32xbf16>
    %c0_1 = arith.constant 0 : index
    %c0_2 = arith.constant 0 : index
    %2 = vector.load %arg2[%c0_1, %c0_2] : memref<32x64xbf16, #tpu.memory_space<vmem>>, vector<32x64xbf16>
    %cst = arith.constant dense<0.000000e+00> : vector<24x64xf32>
    %3 = tpu.matmul %1, %2, %cst {dimension_numbers = #tpu.dot_dimension_numbers<[1], [0], [0], [1], [0, 0, 1, 1], [], []>} : vector<24x32xbf16>, vector<32x64xbf16>, vector<24x64xf32> -> vector<24x64xf32>
    %c0_3 = arith.constant 0 : index
    %c0_4 = arith.constant 0 : index
    %4 = vector.load %arg3[%c0_3, %c0_4] : memref<1x64xf32, #tpu.memory_space<vmem>>, vector<1x64xf32>
    %5 = vector.broadcast %4 : vector<1x64xf32> to vector<24x64xf32>
    %6 = arith.addf %3, %5 : vector<24x64xf32>
    %7 = vector.extract_strided_slice %6 {offsets = [0, 0], sizes = [24, 32], strides = [1, 1]} : vector<24x64xf32> to vector<24x32xf32>
    %8 = arith.truncf %7 : vector<24x32xf32> to vector<24x32xbf16>
    %c0_5 = arith.constant 0 : index
    %c0_6 = arith.constant 0 : index
    %9 = vector.load %arg4[%c0_5, %c0_6] : memref<24x32xbf16, #tpu.memory_space<vmem>>, vector<24x32xbf16>
    tpu.vector_store %arg4[%c0_5, %c0_6], %8 {strides = array<i32>} : memref<24x32xbf16, #tpu.memory_space<vmem>>, vector<24x32xbf16>,
    %10 = vector.extract_strided_slice %6 {offsets = [0, 32], sizes = [24, 32], strides = [1, 1]} : vector<24x64xf32> to vector<24x32xf32>
    %11 = arith.truncf %10 : vector<24x32xf32> to vector<24x32xbf16>
    %c0_7 = arith.constant 0 : index
    %c0_8 = arith.constant 0 : index
    %12 = vector.load %arg5[%c0_7, %c0_8] : memref<24x32xbf16, #tpu.memory_space<vmem>>, vector<24x32xbf16>
    tpu.vector_store %arg5[%c0_7, %c0_8], %11 {strides = array<i32>} : memref<24x32xbf16, #tpu.memory_space<vmem>>, vector<24x32xbf16>,
    return
  }
  func.func @transform_0(%arg0: i32) -> (i32, i32) {
    %c0_i32 = arith.constant 0 : i32
    %c0_i32_0 = arith.constant 0 : i32
    return %arg0, %c0_i32 : i32, i32
  }
  func.func @transform_1(%arg0: i32) -> (i32, i32) {
    %c0_i32 = arith.constant 0 : i32
    %c0_i32_0 = arith.constant 0 : i32
    %c0_i32_1 = arith.constant 0 : i32
    return %c0_i32, %c0_i32_0 : i32, i32
  }
  func.func @transform_2(%arg0: i32) -> (i32, i32) {
    %c0_i32 = arith.constant 0 : i32
    %c0_i32_0 = arith.constant 0 : i32
    %c0_i32_1 = arith.constant 0 : i32
    return %c0_i32, %c0_i32_0 : i32, i32
  }
  func.func @transform_3(%arg0: i32) -> (i32, i32) {
    %c0_i32 = arith.constant 0 : i32
    %c0_i32_0 = arith.constant 0 : i32
    return %arg0, %c0_i32 : i32, i32
  }
  func.func @transform_4(%arg0: i32) -> (i32, i32) {
    %c0_i32 = arith.constant 0 : i32
    %c0_i32_0 = arith.constant 0 : i32
    return %arg0, %c0_i32 : i32, i32
  }
}

module attributes {stable_mosaic.version = 11 : i64} {
  func.func @_bn_apply_kernel(%arg0: i32, %arg1: memref<16x32xf32, #tpu.memory_space<vmem>>, %arg2: memref<2x32xf32, #tpu.memory_space<vmem>>, %arg3: memref<1x32xf32, #tpu.memory_space<vmem>>, %arg4: memref<1x32xf32, #tpu.memory_space<vmem>>, %arg5: memref<16x32xf32, #tpu.memory_space<vmem>>) attributes {dimension_semantics = [#tpu.dimension_semantics<parallel>], iteration_bounds = array<i64: 1>, scalar_prefetch = 0 : i64, scratch_operands = 0 : i64, tpu.core_type = #tpu.core_type<tc>, window_params = [{transform_indices = @transform_0, window_bounds = array<i64: 16, 32>}, {pipeline_mode = #tpu.pipeline_mode<synchronous>, transform_indices = @transform_1, window_bounds = array<i64: 2, 32>}, {pipeline_mode = #tpu.pipeline_mode<synchronous>, transform_indices = @transform_2, window_bounds = array<i64: 1, 32>}, {pipeline_mode = #tpu.pipeline_mode<synchronous>, transform_indices = @transform_3, window_bounds = array<i64: 1, 32>}, {transform_indices = @transform_4, window_bounds = array<i64: 16, 32>}]} {
    %c0 = arith.constant 0 : index
    %c0_0 = arith.constant 0 : index
    %0 = vector.load %arg1[%c0, %c0_0] : memref<16x32xf32, #tpu.memory_space<vmem>>, vector<16x32xf32>
    %c0_1 = arith.constant 0 : index
    %c0_2 = arith.constant 0 : index
    %1 = vector.load %arg2[%c0_1, %c0_2] : memref<2x32xf32, #tpu.memory_space<vmem>>, vector<2x32xf32>
    %c0_3 = arith.constant 0 : index
    %c0_4 = arith.constant 0 : index
    %2 = vector.load %arg3[%c0_3, %c0_4] : memref<1x32xf32, #tpu.memory_space<vmem>>, vector<1x32xf32>
    %c0_5 = arith.constant 0 : index
    %c0_6 = arith.constant 0 : index
    %3 = vector.load %arg4[%c0_5, %c0_6] : memref<1x32xf32, #tpu.memory_space<vmem>>, vector<1x32xf32>
    %4 = vector.extract_strided_slice %1 {offsets = [0, 0], sizes = [1, 32], strides = [1, 1]} : vector<2x32xf32> to vector<1x32xf32>
    %cst = arith.constant 6.250000e-02 : f32
    %5 = vector.broadcast %cst : f32 to vector<1x32xf32>
    %6 = arith.mulf %4, %5 : vector<1x32xf32>
    %7 = vector.extract_strided_slice %1 {offsets = [1, 0], sizes = [1, 32], strides = [1, 1]} : vector<2x32xf32> to vector<1x32xf32>
    %cst_7 = arith.constant 6.250000e-02 : f32
    %8 = vector.broadcast %cst_7 : f32 to vector<1x32xf32>
    %9 = arith.mulf %7, %8 : vector<1x32xf32>
    %10 = arith.mulf %6, %6 : vector<1x32xf32>
    %11 = arith.subf %9, %10 : vector<1x32xf32>
    %12 = vector.broadcast %6 : vector<1x32xf32> to vector<16x32xf32>
    %13 = arith.subf %0, %12 : vector<16x32xf32>
    %cst_8 = arith.constant 9.99999974E-6 : f32
    %14 = vector.broadcast %cst_8 : f32 to vector<1x32xf32>
    %15 = arith.addf %11, %14 : vector<1x32xf32>
    %16 = math.rsqrt %15 : vector<1x32xf32>
    %17 = arith.mulf %2, %16 : vector<1x32xf32>
    %18 = vector.broadcast %17 : vector<1x32xf32> to vector<16x32xf32>
    %19 = arith.mulf %13, %18 : vector<16x32xf32>
    %20 = vector.broadcast %3 : vector<1x32xf32> to vector<16x32xf32>
    %21 = arith.addf %19, %20 : vector<16x32xf32>
    %c0_9 = arith.constant 0 : index
    %c0_10 = arith.constant 0 : index
    %22 = vector.load %arg5[%c0_9, %c0_10] : memref<16x32xf32, #tpu.memory_space<vmem>>, vector<16x32xf32>
    tpu.vector_store %arg5[%c0_9, %c0_10], %21 {strides = array<i32>} : memref<16x32xf32, #tpu.memory_space<vmem>>, vector<16x32xf32>,
    return
  }
  func.func @transform_0(%arg0: i32) -> (i32, i32) {
    %c0_i32 = arith.constant 0 : i32
    %c0_i32_0 = arith.constant 0 : i32
    return %arg0, %c0_i32 : i32, i32
  }
  func.func @transform_1(%arg0: i32) -> (i32, i32) {
    %c0_i32 = arith.constant 0 : i32
    %c0_i32_0 = arith.constant 0 : i32
    %c0_i32_1 = arith.constant 0 : i32
    return %c0_i32, %c0_i32_0 : i32, i32
  }
  func.func @transform_2(%arg0: i32) -> (i32, i32) {
    %c0_i32 = arith.constant 0 : i32
    %c0_i32_0 = arith.constant 0 : i32
    %c0_i32_1 = arith.constant 0 : i32
    return %c0_i32, %c0_i32_0 : i32, i32
  }
  func.func @transform_3(%arg0: i32) -> (i32, i32) {
    %c0_i32 = arith.constant 0 : i32
    %c0_i32_0 = arith.constant 0 : i32
    %c0_i32_1 = arith.constant 0 : i32
    return %c0_i32, %c0_i32_0 : i32, i32
  }
  func.func @transform_4(%arg0: i32) -> (i32, i32) {
    %c0_i32 = arith.constant 0 : i32
    %c0_i32_0 = arith.constant 0 : i32
    return %arg0, %c0_i32 : i32, i32
  }
}

module attributes {stable_mosaic.version = 11 : i64} {
  func.func @_bn_ffn_kernel(%arg0: i32, %arg1: memref<16x32xf32, #tpu.memory_space<vmem>>, %arg2: memref<2x32xf32, #tpu.memory_space<vmem>>, %arg3: memref<1x32xf32, #tpu.memory_space<vmem>>, %arg4: memref<1x32xf32, #tpu.memory_space<vmem>>, %arg5: memref<32x128xbf16, #tpu.memory_space<vmem>>, %arg6: memref<1x128xf32, #tpu.memory_space<vmem>>, %arg7: memref<128x32xbf16, #tpu.memory_space<vmem>>, %arg8: memref<1x32xf32, #tpu.memory_space<vmem>>, %arg9: memref<16x32xf32, #tpu.memory_space<vmem>>, %arg10: memref<1x2x32xf32, #tpu.memory_space<vmem>>) attributes {dimension_semantics = [#tpu.dimension_semantics<parallel>], iteration_bounds = array<i64: 1>, scalar_prefetch = 0 : i64, scratch_operands = 0 : i64, tpu.core_type = #tpu.core_type<tc>, window_params = [{transform_indices = @transform_0, window_bounds = array<i64: 16, 32>}, {pipeline_mode = #tpu.pipeline_mode<synchronous>, transform_indices = @transform_1, window_bounds = array<i64: 2, 32>}, {pipeline_mode = #tpu.pipeline_mode<synchronous>, transform_indices = @transform_2, window_bounds = array<i64: 1, 32>}, {pipeline_mode = #tpu.pipeline_mode<synchronous>, transform_indices = @transform_3, window_bounds = array<i64: 1, 32>}, {pipeline_mode = #tpu.pipeline_mode<synchronous>, transform_indices = @transform_4, window_bounds = array<i64: 32, 128>}, {pipeline_mode = #tpu.pipeline_mode<synchronous>, transform_indices = @transform_5, window_bounds = array<i64: 1, 128>}, {pipeline_mode = #tpu.pipeline_mode<synchronous>, transform_indices = @transform_6, window_bounds = array<i64: 128, 32>}, {pipeline_mode = #tpu.pipeline_mode<synchronous>, transform_indices = @transform_7, window_bounds = array<i64: 1, 32>}, {transform_indices = @transform_8, window_bounds = array<i64: 16, 32>}, {transform_indices = @transform_9, window_bounds = array<i64: 1, 2, 32>}]} {
    %c0 = arith.constant 0 : index
    %c0_0 = arith.constant 0 : index
    %0 = vector.load %arg1[%c0, %c0_0] : memref<16x32xf32, #tpu.memory_space<vmem>>, vector<16x32xf32>
    %c0_1 = arith.constant 0 : index
    %c0_2 = arith.constant 0 : index
    %1 = vector.load %arg2[%c0_1, %c0_2] : memref<2x32xf32, #tpu.memory_space<vmem>>, vector<2x32xf32>
    %c0_3 = arith.constant 0 : index
    %c0_4 = arith.constant 0 : index
    %2 = vector.load %arg3[%c0_3, %c0_4] : memref<1x32xf32, #tpu.memory_space<vmem>>, vector<1x32xf32>
    %c0_5 = arith.constant 0 : index
    %c0_6 = arith.constant 0 : index
    %3 = vector.load %arg4[%c0_5, %c0_6] : memref<1x32xf32, #tpu.memory_space<vmem>>, vector<1x32xf32>
    %4 = vector.extract_strided_slice %1 {offsets = [0, 0], sizes = [1, 32], strides = [1, 1]} : vector<2x32xf32> to vector<1x32xf32>
    %cst = arith.constant 6.250000e-02 : f32
    %5 = vector.broadcast %cst : f32 to vector<1x32xf32>
    %6 = arith.mulf %4, %5 : vector<1x32xf32>
    %7 = vector.extract_strided_slice %1 {offsets = [1, 0], sizes = [1, 32], strides = [1, 1]} : vector<2x32xf32> to vector<1x32xf32>
    %cst_7 = arith.constant 6.250000e-02 : f32
    %8 = vector.broadcast %cst_7 : f32 to vector<1x32xf32>
    %9 = arith.mulf %7, %8 : vector<1x32xf32>
    %10 = arith.mulf %6, %6 : vector<1x32xf32>
    %11 = arith.subf %9, %10 : vector<1x32xf32>
    %12 = vector.broadcast %6 : vector<1x32xf32> to vector<16x32xf32>
    %13 = arith.subf %0, %12 : vector<16x32xf32>
    %cst_8 = arith.constant 9.99999974E-6 : f32
    %14 = vector.broadcast %cst_8 : f32 to vector<1x32xf32>
    %15 = arith.addf %11, %14 : vector<1x32xf32>
    %16 = math.rsqrt %15 : vector<1x32xf32>
    %17 = arith.mulf %2, %16 : vector<1x32xf32>
    %18 = vector.broadcast %17 : vector<1x32xf32> to vector<16x32xf32>
    %19 = arith.mulf %13, %18 : vector<16x32xf32>
    %20 = vector.broadcast %3 : vector<1x32xf32> to vector<16x32xf32>
    %21 = arith.addf %19, %20 : vector<16x32xf32>
    %22 = arith.truncf %21 : vector<16x32xf32> to vector<16x32xbf16>
    %c0_9 = arith.constant 0 : index
    %c0_10 = arith.constant 0 : index
    %23 = vector.load %arg5[%c0_9, %c0_10] : memref<32x128xbf16, #tpu.memory_space<vmem>>, vector<32x128xbf16>
    %cst_11 = arith.constant dense<0.000000e+00> : vector<16x128xf32>
    %24 = tpu.matmul %22, %23, %cst_11 {dimension_numbers = #tpu.dot_dimension_numbers<[1], [0], [0], [1], [0, 0, 1, 1], [], []>} : vector<16x32xbf16>, vector<32x128xbf16>, vector<16x128xf32> -> vector<16x128xf32>
    %c0_12 = arith.constant 0 : index
    %c0_13 = arith.constant 0 : index
    %25 = vector.load %arg6[%c0_12, %c0_13] : memref<1x128xf32, #tpu.memory_space<vmem>>, vector<1x128xf32>
    %26 = vector.broadcast %25 : vector<1x128xf32> to vector<16x128xf32>
    %27 = arith.addf %24, %26 : vector<16x128xf32>
    %cst_14 = arith.constant 0.000000e+00 : f32
    %28 = vector.broadcast %cst_14 : f32 to vector<16x128xf32>
    %29 = arith.maximumf %27, %28 : vector<16x128xf32>
    %30 = arith.truncf %29 : vector<16x128xf32> to vector<16x128xbf16>
    %c0_15 = arith.constant 0 : index
    %c0_16 = arith.constant 0 : index
    %31 = vector.load %arg7[%c0_15, %c0_16] : memref<128x32xbf16, #tpu.memory_space<vmem>>, vector<128x32xbf16>
    %cst_17 = arith.constant dense<0.000000e+00> : vector<16x32xf32>
    %32 = tpu.matmul %30, %31, %cst_17 {dimension_numbers = #tpu.dot_dimension_numbers<[1], [0], [0], [1], [0, 0, 1, 1], [], []>} : vector<16x128xbf16>, vector<128x32xbf16>, vector<16x32xf32> -> vector<16x32xf32>
    %c0_18 = arith.constant 0 : index
    %c0_19 = arith.constant 0 : index
    %33 = vector.load %arg8[%c0_18, %c0_19] : memref<1x32xf32, #tpu.memory_space<vmem>>, vector<1x32xf32>
    %34 = vector.broadcast %33 : vector<1x32xf32> to vector<16x32xf32>
    %35 = arith.addf %32, %34 : vector<16x32xf32>
    %36 = arith.addf %21, %35 : vector<16x32xf32>
    %c0_20 = arith.constant 0 : index
    %c0_21 = arith.constant 0 : index
    %37 = vector.load %arg9[%c0_20, %c0_21] : memref<16x32xf32, #tpu.memory_space<vmem>>, vector<16x32xf32>
    tpu.vector_store %arg9[%c0_20, %c0_21], %36 {strides = array<i32>} : memref<16x32xf32, #tpu.memory_space<vmem>>, vector<16x32xf32>,
    %cst_22 = arith.constant dense<0.000000e+00> : vector<32xf32>
    %38 = vector.multi_reduction <add>, %36, %cst_22 [0] : vector<16x32xf32> to vector<32xf32>
    %39 = vector.shape_cast %38 : vector<32xf32> to vector<1x32xf32>
    %c0_23 = arith.constant 0 : index
    %c0_24 = arith.constant 0 : index
    %c0_25 = arith.constant 0 : index
    %40 = vector.load %arg10[%c0_23, %c0_24, %c0_25] : memref<1x2x32xf32, #tpu.memory_space<vmem>>, vector<1x1x32xf32>
    %41 = vector.shape_cast %40 : vector<1x1x32xf32> to vector<1x32xf32>
    %42 = vector.shape_cast %39 : vector<1x32xf32> to vector<1x1x32xf32>
    tpu.vector_store %arg10[%c0_23, %c0_24, %c0_25], %42 {strides = array<i32>} : memref<1x2x32xf32, #tpu.memory_space<vmem>>, vector<1x1x32xf32>,
    %43 = arith.mulf %36, %36 : vector<16x32xf32>
    %cst_26 = arith.constant dense<0.000000e+00> : vector<32xf32>
    %44 = vector.multi_reduction <add>, %43, %cst_26 [0] : vector<16x32xf32> to vector<32xf32>
    %45 = vector.shape_cast %44 : vector<32xf32> to vector<1x32xf32>
    %c0_27 = arith.constant 0 : index
    %c1 = arith.constant 1 : index
    %c0_28 = arith.constant 0 : index
    %46 = vector.load %arg10[%c0_27, %c1, %c0_28] : memref<1x2x32xf32, #tpu.memory_space<vmem>>, vector<1x1x32xf32>
    %47 = vector.shape_cast %46 : vector<1x1x32xf32> to vector<1x32xf32>
    %48 = vector.shape_cast %45 : vector<1x32xf32> to vector<1x1x32xf32>
    tpu.vector_store %arg10[%c0_27, %c1, %c0_28], %48 {strides = array<i32>} : memref<1x2x32xf32, #tpu.memory_space<vmem>>, vector<1x1x32xf32>,
    return
  }
  func.func @transform_0(%arg0: i32) -> (i32, i32) {
    %c0_i32 = arith.constant 0 : i32
    %c0_i32_0 = arith.constant 0 : i32
    return %arg0, %c0_i32 : i32, i32
  }
  func.func @transform_1(%arg0: i32) -> (i32, i32) {
    %c0_i32 = arith.constant 0 : i32
    %c0_i32_0 = arith.constant 0 : i32
    %c0_i32_1 = arith.constant 0 : i32
    return %c0_i32, %c0_i32_0 : i32, i32
  }
  func.func @transform_2(%arg0: i32) -> (i32, i32) {
    %c0_i32 = arith.constant 0 : i32
    %c0_i32_0 = arith.constant 0 : i32
    %c0_i32_1 = arith.constant 0 : i32
    return %c0_i32, %c0_i32_0 : i32, i32
  }
  func.func @transform_3(%arg0: i32) -> (i32, i32) {
    %c0_i32 = arith.constant 0 : i32
    %c0_i32_0 = arith.constant 0 : i32
    %c0_i32_1 = arith.constant 0 : i32
    return %c0_i32, %c0_i32_0 : i32, i32
  }
  func.func @transform_4(%arg0: i32) -> (i32, i32) {
    %c0_i32 = arith.constant 0 : i32
    %c0_i32_0 = arith.constant 0 : i32
    %c0_i32_1 = arith.constant 0 : i32
    return %c0_i32, %c0_i32_0 : i32, i32
  }
  func.func @transform_5(%arg0: i32) -> (i32, i32) {
    %c0_i32 = arith.constant 0 : i32
    %c0_i32_0 = arith.constant 0 : i32
    %c0_i32_1 = arith.constant 0 : i32
    return %c0_i32, %c0_i32_0 : i32, i32
  }
  func.func @transform_6(%arg0: i32) -> (i32, i32) {
    %c0_i32 = arith.constant 0 : i32
    %c0_i32_0 = arith.constant 0 : i32
    %c0_i32_1 = arith.constant 0 : i32
    return %c0_i32, %c0_i32_0 : i32, i32
  }
  func.func @transform_7(%arg0: i32) -> (i32, i32) {
    %c0_i32 = arith.constant 0 : i32
    %c0_i32_0 = arith.constant 0 : i32
    %c0_i32_1 = arith.constant 0 : i32
    return %c0_i32, %c0_i32_0 : i32, i32
  }
  func.func @transform_8(%arg0: i32) -> (i32, i32) {
    %c0_i32 = arith.constant 0 : i32
    %c0_i32_0 = arith.constant 0 : i32
    return %arg0, %c0_i32 : i32, i32
  }
  func.func @transform_9(%arg0: i32) -> (i32, i32, i32) {
    %c0_i32 = arith.constant 0 : i32
    %c0_i32_0 = arith.constant 0 : i32
    %c0_i32_1 = arith.constant 0 : i32
    return %arg0, %c0_i32, %c0_i32_0 : i32, i32, i32
  }
}

module attributes {stable_mosaic.version = 11 : i64} {
  func.func @_attn_fused_kernel(%arg0: i32, %arg1: i32, %arg2: memref<1x4x8x8xbf16, #tpu.memory_space<vmem>>, %arg3: memref<1x4x12x8xbf16, #tpu.memory_space<vmem>>, %arg4: memref<1x4x12x8xbf16, #tpu.memory_space<vmem>>, %arg5: memref<1x8x32xf32, #tpu.memory_space<vmem>>, %arg6: memref<4x8x32xbf16, #tpu.memory_space<vmem>>, %arg7: memref<1x32xf32, #tpu.memory_space<vmem>>, %arg8: memref<1x8x32xf32, #tpu.memory_space<vmem>>, %arg9: memref<1x4x8x12xf32, #tpu.memory_space<vmem>>, %arg10: memref<1x2x32xf32, #tpu.memory_space<vmem>>) attributes {dimension_semantics = [#tpu.dimension_semantics<parallel>, #tpu.dimension_semantics<parallel>], iteration_bounds = array<i64: 2, 1>, scalar_prefetch = 0 : i64, scratch_operands = 0 : i64, tpu.core_type = #tpu.core_type<tc>, window_params = [{transform_indices = @transform_0, window_bounds = array<i64: 1, 4, 8, 8>}, {transform_indices = @transform_1, window_bounds = array<i64: 1, 4, 12, 8>}, {transform_indices = @transform_2, window_bounds = array<i64: 1, 4, 12, 8>}, {transform_indices = @transform_3, window_bounds = array<i64: 1, 8, 32>}, {pipeline_mode = #tpu.pipeline_mode<synchronous>, transform_indices = @transform_4, window_bounds = array<i64: 4, 8, 32>}, {pipeline_mode = #tpu.pipeline_mode<synchronous>, transform_indices = @transform_5, window_bounds = array<i64: 1, 32>}, {transform_indices = @transform_6, window_bounds = array<i64: 1, 8, 32>}, {transform_indices = @transform_7, window_bounds = array<i64: 1, 4, 8, 12>}, {transform_indices = @transform_8, window_bounds = array<i64: 1, 2, 32>}]} {
    %c0 = arith.constant 0 : index
    %c0_0 = arith.constant 0 : index
    %c0_1 = arith.constant 0 : index
    %c0_2 = arith.constant 0 : index
    %0 = vector.load %arg2[%c0, %c0_0, %c0_1, %c0_2] : memref<1x4x8x8xbf16, #tpu.memory_space<vmem>>, vector<1x4x8x8xbf16>
    %1 = vector.shape_cast %0 : vector<1x4x8x8xbf16> to vector<4x8x8xbf16>
    %2 = arith.extf %1 : vector<4x8x8xbf16> to vector<4x8x8xf32>
    %cst = arith.constant 0.353553385 : f32
    %3 = vector.broadcast %cst : f32 to vector<4x8x8xf32>
    %4 = arith.mulf %2, %3 : vector<4x8x8xf32>
    %5 = arith.truncf %4 : vector<4x8x8xf32> to vector<4x8x8xbf16>
    %c0_3 = arith.constant 0 : index
    %c0_4 = arith.constant 0 : index
    %c0_5 = arith.constant 0 : index
    %c0_6 = arith.constant 0 : index
    %6 = vector.load %arg3[%c0_3, %c0_4, %c0_5, %c0_6] : memref<1x4x12x8xbf16, #tpu.memory_space<vmem>>, vector<1x4x12x8xbf16>
    %7 = vector.shape_cast %6 : vector<1x4x12x8xbf16> to vector<4x12x8xbf16>
    "tpu.trace_start"() <{level = 10 : i32, message = "hqd,hkd->hqk"}> : () -> ()
    %cst_7 = arith.constant dense<0.000000e+00> : vector<4x8x12xf32>
    %8 = tpu.matmul %5, %7, %cst_7 {dimension_numbers = #tpu.dot_dimension_numbers<[2], [2], [1], [1], [0, 0, 0, 1, 1, 1], [0], [0]>} : vector<4x8x8xbf16>, vector<4x12x8xbf16>, vector<4x8x12xf32> -> vector<4x8x12xf32>
    "tpu.trace_stop"() : () -> ()
    %cst_8 = arith.constant dense<0xFF800000> : vector<4x8xf32>
    %9 = vector.multi_reduction <maximumf>, %8, %cst_8 [2] : vector<4x8x12xf32> to vector<4x8xf32>
    %10 = vector.shape_cast %9 : vector<4x8xf32> to vector<4x8x1xf32>
    %11 = vector.broadcast %10 : vector<4x8x1xf32> to vector<4x8x12xf32>
    %12 = arith.subf %8, %11 : vector<4x8x12xf32>
    %13 = math.exp %12 : vector<4x8x12xf32>
    %cst_9 = arith.constant dense<0.000000e+00> : vector<4x8xf32>
    %14 = vector.multi_reduction <add>, %13, %cst_9 [2] : vector<4x8x12xf32> to vector<4x8xf32>
    %15 = vector.shape_cast %14 : vector<4x8xf32> to vector<4x8x1xf32>
    %cst_10 = arith.constant 1.000000e+00 : f32
    %16 = vector.broadcast %cst_10 : f32 to vector<4x8x1xf32>
    %17 = arith.divf %16, %15 : vector<4x8x1xf32>
    %18 = vector.broadcast %17 : vector<4x8x1xf32> to vector<4x8x12xf32>
    %19 = arith.mulf %13, %18 : vector<4x8x12xf32>
    %c0_11 = arith.constant 0 : index
    %c0_12 = arith.constant 0 : index
    %c0_13 = arith.constant 0 : index
    %c0_14 = arith.constant 0 : index
    %20 = vector.load %arg9[%c0_11, %c0_12, %c0_13, %c0_14] : memref<1x4x8x12xf32, #tpu.memory_space<vmem>>, vector<1x4x8x12xf32>
    %21 = vector.shape_cast %20 : vector<1x4x8x12xf32> to vector<4x8x12xf32>
    %22 = vector.shape_cast %19 : vector<4x8x12xf32> to vector<1x4x8x12xf32>
    tpu.vector_store %arg9[%c0_11, %c0_12, %c0_13, %c0_14], %22 {strides = array<i32>} : memref<1x4x8x12xf32, #tpu.memory_space<vmem>>, vector<1x4x8x12xf32>,
    %23 = arith.truncf %19 : vector<4x8x12xf32> to vector<4x8x12xbf16>
    %c0_15 = arith.constant 0 : index
    %c0_16 = arith.constant 0 : index
    %c0_17 = arith.constant 0 : index
    %c0_18 = arith.constant 0 : index
    %24 = vector.load %arg4[%c0_15, %c0_16, %c0_17, %c0_18] : memref<1x4x12x8xbf16, #tpu.memory_space<vmem>>, vector<1x4x12x8xbf16>
    %25 = vector.shape_cast %24 : vector<1x4x12x8xbf16> to vector<4x12x8xbf16>
    "tpu.trace_start"() <{level = 10 : i32, message = "hqk,hkd->hqd"}> : () -> ()
    %cst_19 = arith.constant dense<0.000000e+00> : vector<4x8x8xf32>
    %26 = tpu.matmul %23, %25, %cst_19 {dimension_numbers = #tpu.dot_dimension_numbers<[2], [1], [1], [2], [0, 0, 0, 1, 1, 2], [0], [0]>} : vector<4x8x12xbf16>, vector<4x12x8xbf16>, vector<4x8x8xf32> -> vector<4x8x8xf32>
    "tpu.trace_stop"() : () -> ()
    %c0_20 = arith.constant 0 : index
    %c0_21 = arith.constant 0 : index
    %c0_22 = arith.constant 0 : index
    %27 = vector.load %arg5[%c0_20, %c0_21, %c0_22] : memref<1x8x32xf32, #tpu.memory_space<vmem>>, vector<1x8x32xf32>
    %28 = vector.shape_cast %27 : vector<1x8x32xf32> to vector<8x32xf32>
    %c0_23 = arith.constant 0 : index
    %c0_24 = arith.constant 0 : index
    %29 = vector.load %arg7[%c0_23, %c0_24] : memref<1x32xf32, #tpu.memory_space<vmem>>, vector<1x32xf32>
    %30 = vector.broadcast %29 : vector<1x32xf32> to vector<8x32xf32>
    %31 = arith.addf %28, %30 : vector<8x32xf32>
    %32 = vector.extract_strided_slice %26 {offsets = [0, 0, 0], sizes = [1, 8, 8], strides = [1, 1, 1]} : vector<4x8x8xf32> to vector<1x8x8xf32>
    %33 = vector.shape_cast %32 : vector<1x8x8xf32> to vector<8x8xf32>
    %34 = arith.truncf %33 : vector<8x8xf32> to vector<8x8xbf16>
    %c0_25 = arith.constant 0 : index
    %c0_26 = arith.constant 0 : index
    %c0_27 = arith.constant 0 : index
    %35 = vector.load %arg6[%c0_25, %c0_26, %c0_27] : memref<4x8x32xbf16, #tpu.memory_space<vmem>>, vector<1x8x32xbf16>
    %36 = vector.shape_cast %35 : vector<1x8x32xbf16> to vector<8x32xbf16>
    %cst_28 = arith.constant dense<0.000000e+00> : vector<8x32xf32>
    %37 = tpu.matmul %34, %36, %cst_28 {dimension_numbers = #tpu.dot_dimension_numbers<[1], [0], [0], [1], [0, 0, 1, 1], [], []>} : vector<8x8xbf16>, vector<8x32xbf16>, vector<8x32xf32> -> vector<8x32xf32>
    %38 = arith.addf %31, %37 : vector<8x32xf32>
    %39 = vector.extract_strided_slice %26 {offsets = [1, 0, 0], sizes = [1, 8, 8], strides = [1, 1, 1]} : vector<4x8x8xf32> to vector<1x8x8xf32>
    %40 = vector.shape_cast %39 : vector<1x8x8xf32> to vector<8x8xf32>
    %41 = arith.truncf %40 : vector<8x8xf32> to vector<8x8xbf16>
    %c1 = arith.constant 1 : index
    %c0_29 = arith.constant 0 : index
    %c0_30 = arith.constant 0 : index
    %42 = vector.load %arg6[%c1, %c0_29, %c0_30] : memref<4x8x32xbf16, #tpu.memory_space<vmem>>, vector<1x8x32xbf16>
    %43 = vector.shape_cast %42 : vector<1x8x32xbf16> to vector<8x32xbf16>
    %cst_31 = arith.constant dense<0.000000e+00> : vector<8x32xf32>
    %44 = tpu.matmul %41, %43, %cst_31 {dimension_numbers = #tpu.dot_dimension_numbers<[1], [0], [0], [1], [0, 0, 1, 1], [], []>} : vector<8x8xbf16>, vector<8x32xbf16>, vector<8x32xf32> -> vector<8x32xf32>
    %45 = arith.addf %38, %44 : vector<8x32xf32>
    %46 = vector.extract_strided_slice %26 {offsets = [2, 0, 0], sizes = [1, 8, 8], strides = [1, 1, 1]} : vector<4x8x8xf32> to vector<1x8x8xf32>
    %47 = vector.shape_cast %46 : vector<1x8x8xf32> to vector<8x8xf32>
    %48 = arith.truncf %47 : vector<8x8xf32> to vector<8x8xbf16>
    %c2 = arith.constant 2 : index
    %c0_32 = arith.constant 0 : index
    %c0_33 = arith.constant 0 : index
    %49 = vector.load %arg6[%c2, %c0_32, %c0_33] : memref<4x8x32xbf16, #tpu.memory_space<vmem>>, vector<1x8x32xbf16>
    %50 = vector.shape_cast %49 : vector<1x8x32xbf16> to vector<8x32xbf16>
    %cst_34 = arith.constant dense<0.000000e+00> : vector<8x32xf32>
    %51 = tpu.matmul %48, %50, %cst_34 {dimension_numbers = #tpu.dot_dimension_numbers<[1], [0], [0], [1], [0, 0, 1, 1], [], []>} : vector<8x8xbf16>, vector<8x32xbf16>, vector<8x32xf32> -> vector<8x32xf32>
    %52 = arith.addf %45, %51 : vector<8x32xf32>
    %53 = vector.extract_strided_slice %26 {offsets = [3, 0, 0], sizes = [1, 8, 8], strides = [1, 1, 1]} : vector<4x8x8xf32> to vector<1x8x8xf32>
    %54 = vector.shape_cast %53 : vector<1x8x8xf32> to vector<8x8xf32>
    %55 = arith.truncf %54 : vector<8x8xf32> to vector<8x8xbf16>
    %c3 = arith.constant 3 : index
    %c0_35 = arith.constant 0 : index
    %c0_36 = arith.constant 0 : index
    %56 = vector.load %arg6[%c3, %c0_35, %c0_36] : memref<4x8x32xbf16, #tpu.memory_space<vmem>>, vector<1x8x32xbf16>
    %57 = vector.shape_cast %56 : vector<1x8x32xbf16> to vector<8x32xbf16>
    %cst_37 = arith.constant dense<0.000000e+00> : vector<8x32xf32>
    %58 = tpu.matmul %55, %57, %cst_37 {dimension_numbers = #tpu.dot_dimension_numbers<[1], [0], [0], [1], [0, 0, 1, 1], [], []>} : vector<8x8xbf16>, vector<8x32xbf16>, vector<8x32xf32> -> vector<8x32xf32>
    %59 = arith.addf %52, %58 : vector<8x32xf32>
    %c0_38 = arith.constant 0 : index
    %c0_39 = arith.constant 0 : index
    %c0_40 = arith.constant 0 : index
    %60 = vector.load %arg8[%c0_38, %c0_39, %c0_40] : memref<1x8x32xf32, #tpu.memory_space<vmem>>, vector<1x8x32xf32>
    %61 = vector.shape_cast %60 : vector<1x8x32xf32> to vector<8x32xf32>
    %62 = vector.shape_cast %59 : vector<8x32xf32> to vector<1x8x32xf32>
    tpu.vector_store %arg8[%c0_38, %c0_39, %c0_40], %62 {strides = array<i32>} : memref<1x8x32xf32, #tpu.memory_space<vmem>>, vector<1x8x32xf32>,
    %cst_41 = arith.constant dense<0.000000e+00> : vector<32xf32>
    %63 = vector.multi_reduction <add>, %59, %cst_41 [0] : vector<8x32xf32> to vector<32xf32>
    %64 = vector.shape_cast %63 : vector<32xf32> to vector<1x32xf32>
    %c0_42 = arith.constant 0 : index
    %c0_43 = arith.constant 0 : index
    %c0_44 = arith.constant 0 : index
    %65 = vector.load %arg10[%c0_42, %c0_43, %c0_44] : memref<1x2x32xf32, #tpu.memory_space<vmem>>, vector<1x1x32xf32>
    %66 = vector.shape_cast %65 : vector<1x1x32xf32> to vector<1x32xf32>
    %67 = vector.shape_cast %64 : vector<1x32xf32> to vector<1x1x32xf32>
    tpu.vector_store %arg10[%c0_42, %c0_43, %c0_44], %67 {strides = array<i32>} : memref<1x2x32xf32, #tpu.memory_space<vmem>>, vector<1x1x32xf32>,
    %68 = arith.mulf %59, %59 : vector<8x32xf32>
    %cst_45 = arith.constant dense<0.000000e+00> : vector<32xf32>
    %69 = vector.multi_reduction <add>, %68, %cst_45 [0] : vector<8x32xf32> to vector<32xf32>
    %70 = vector.shape_cast %69 : vector<32xf32> to vector<1x32xf32>
    %c0_46 = arith.constant 0 : index
    %c1_47 = arith.constant 1 : index
    %c0_48 = arith.constant 0 : index
    %71 = vector.load %arg10[%c0_46, %c1_47, %c0_48] : memref<1x2x32xf32, #tpu.memory_space<vmem>>, vector<1x1x32xf32>
    %72 = vector.shape_cast %71 : vector<1x1x32xf32> to vector<1x32xf32>
    %73 = vector.shape_cast %70 : vector<1x32xf32> to vector<1x1x32xf32>
    tpu.vector_store %arg10[%c0_46, %c1_47, %c0_48], %73 {strides = array<i32>} : memref<1x2x32xf32, #tpu.memory_space<vmem>>, vector<1x1x32xf32>,
    return
  }
  func.func @transform_0(%arg0: i32, %arg1: i32) -> (i32, i32, i32, i32) {
    %c0_i32 = arith.constant 0 : i32
    %c0_i32_0 = arith.constant 0 : i32
    %c0_i32_1 = arith.constant 0 : i32
    return %arg0, %c0_i32, %arg1, %c0_i32_0 : i32, i32, i32, i32
  }
  func.func @transform_1(%arg0: i32, %arg1: i32) -> (i32, i32, i32, i32) {
    %c0_i32 = arith.constant 0 : i32
    %c0_i32_0 = arith.constant 0 : i32
    %c0_i32_1 = arith.constant 0 : i32
    %c0_i32_2 = arith.constant 0 : i32
    return %arg0, %c0_i32, %c0_i32_0, %c0_i32_1 : i32, i32, i32, i32
  }
  func.func @transform_2(%arg0: i32, %arg1: i32) -> (i32, i32, i32, i32) {
    %c0_i32 = arith.constant 0 : i32
    %c0_i32_0 = arith.constant 0 : i32
    %c0_i32_1 = arith.constant 0 : i32
    %c0_i32_2 = arith.constant 0 : i32
    return %arg0, %c0_i32, %c0_i32_0, %c0_i32_1 : i32, i32, i32, i32
  }
  func.func @transform_3(%arg0: i32, %arg1: i32) -> (i32, i32, i32) {
    %c0_i32 = arith.constant 0 : i32
    %c0_i32_0 = arith.constant 0 : i32
    return %arg0, %arg1, %c0_i32 : i32, i32, i32
  }
  func.func @transform_4(%arg0: i32, %arg1: i32) -> (i32, i32, i32) {
    %c0_i32 = arith.constant 0 : i32
    %c0_i32_0 = arith.constant 0 : i32
    %c0_i32_1 = arith.constant 0 : i32
    %c0_i32_2 = arith.constant 0 : i32
    return %c0_i32, %c0_i32_0, %c0_i32_1 : i32, i32, i32
  }
  func.func @transform_5(%arg0: i32, %arg1: i32) -> (i32, i32) {
    %c0_i32 = arith.constant 0 : i32
    %c0_i32_0 = arith.constant 0 : i32
    %c0_i32_1 = arith.constant 0 : i32
    return %c0_i32, %c0_i32_0 : i32, i32
  }
  func.func @transform_6(%arg0: i32, %arg1: i32) -> (i32, i32, i32) {
    %c0_i32 = arith.constant 0 : i32
    %c0_i32_0 = arith.constant 0 : i32
    return %arg0, %arg1, %c0_i32 : i32, i32, i32
  }
  func.func @transform_7(%arg0: i32, %arg1: i32) -> (i32, i32, i32, i32) {
    %c0_i32 = arith.constant 0 : i32
    %c0_i32_0 = arith.constant 0 : i32
    %c0_i32_1 = arith.constant 0 : i32
    return %arg0, %c0_i32, %arg1, %c0_i32_0 : i32, i32, i32, i32
  }
  func.func @transform_8(%arg0: i32, %arg1: i32) -> (i32, i32, i32) {
    %c1_i32 = arith.constant 1 : i32
    %0 = arith.muli %arg0, %c1_i32 : i32
    %1 = arith.addi %0, %arg1 : i32
    %c0_i32 = arith.constant 0 : i32
    %c0_i32_0 = arith.constant 0 : i32
    %c0_i32_1 = arith.constant 0 : i32
    return %1, %c0_i32, %c0_i32_0 : i32, i32, i32
  }
}

</mosaic_0001>

<bundles_post_ra>
// kernel: decoder_layer_forward.10
= control target key start
LH: loop header
LB: loop body
LE: loop exit
PB: predicated region body
PF: predicated region fallthrough
CT: control target
= control target key end

     0   :  { %vm42_vm0 = vcmask 261120   ;;  %vm70_vm1 = vcmask 257024   ;;  %s113_s27 = smov 96   ;;  %s181_s1 = inlined_call_operand.vmem [shape: bf16[32,64], index: 1, kind: input, shape index: {}]   ;;  %s182_s0 = inlined_call_operand.vmem [shape: f32[24,32], index: 0, kind: input, shape index: {}]   ;;  %s183_s2 = inlined_call_operand.vmem [shape: f32[1,64], index: 2, kind: input, shape index: {}]   ;;  %s184_s3 = inlined_call_operand.vmem [shape: bf16[24,32], index: 3, kind: output, shape index: {0}]   ;;  %s185_s4 = inlined_call_operand.vmem [shape: bf16[24,32], index: 4, kind: output, shape index: {1}]  }
   0x1   :  { %v108_v0 = vld [vmem:[%s181_s1 + $0x8] sm:$0xff]  ;;  %v107_v1 = vld [vmem:[%s181_s1] sm:$0xff]  ;;  %v19_v4 = vld [vmem:[%s182_s0 + $0x10] sm:$0xff] }
   0x2   :  { %55 = vmatpush.bf16.msra.mxu0 %v108_v0  ;;  %109 = vmatpush.bf16.msra.mxu1 %v108_v0  ;;  %v17_v2 = vld [vmem:[%s182_s0] sm:$0xff]  ;;  %v18_v3 = vld [vmem:[%s182_s0 + $0x8] sm:$0xff]  ;;  %v21_v6 = vpack.c.bf16 %v19_v4, %v19_v4 }
   0x3   :  { %v20_v5 = vpack.c.bf16 %v18_v3, %v17_v2  ;;  %v112_v7 = vld [vmem:[%s183_s2] ss:$0 sm:$0xff] }
   0x6   :  { %56 = vmatpush.bf16.msra.mxu0 %v107_v1  ;;  %110 = vmatpush.bf16.msra.mxu1 %v107_v1 }
   0x9   :  { %105 = vmatmul.msk.bf16.vlgmr.msra.gmra.mxu0 %vm42_vm0, %v20_v5  ;;  %106 = vmatmul.msk.bf16.vlgmr.msra.gmra.mxu1 %vm42_vm0, %v21_v6 }
  0x86   :  { %v58_v8 = vpop.f32.mrf.mxu0  ;;  %v63_v9 = vpop.f32.mrf.mxu1 }
  0x87   :  { %v59_v10 = vadd.f32 %v112_v7, %v58_v8  ;;  %v64_v11 = vadd.f32 %v112_v7, %v63_v9 }
  0x89   :  { %v67_v12 = vpack.c.bf16 %v59_v10, %v59_v10  ;;  %v69_v13 = vpack.c.bf16 %v64_v11, %v64_v11 }
  0x8b   :  { %71 = vst.msk [vmem:[%s184_s3] sm:$0xf] %vm70_vm1, %v67_v12  ;;  %77 = vrot.lane.b32.xlu0 %v67_v12, %s113_s27  ;;  %81 = vrot.lane.b32.xlu1 %v69_v13, %s113_s27 }
  0x8c   :  { %73 = vst.msk [vmem:[%s184_s3 + $0x8] sm:$0xf] %vm70_vm1, %v69_v13 }
  0x8e   :  { %v60_v14 = vpop.f32.mrf.mxu0  ;;  %v65_v15 = vpop.f32.mrf.mxu1 }
  0x8f   :  { %v61_v16 = vadd.f32 %v112_v7, %v60_v14 }
  0x91   :  { %v68_v17 = vpack.c.bf16 %v61_v16, %v61_v16 }
  0x93   :  { %72 = vst.msk [vmem:[%s184_s3 + $0x4] sm:$0xf] %vm70_vm1, %v68_v17  ;;  %79 = vrot.lane.b32.xlu0 %v68_v17, %s113_s27 }
  0xfd   :  { %v78_v18 = vpop.permute.xlu0 %77  ;;  %v82_v19 = vpop.permute.xlu1 %81 }
  0xfe   :  { %86 = vst.msk [vmem:[%s185_s4] sm:$0xf] %vm70_vm1, %v78_v18 }
  0xff   :  { %88 = vst.msk [vmem:[%s185_s4 + $0x8] sm:$0xf] %vm70_vm1, %v82_v19 }
 0x105   :  { %v80_v20 = vpop.permute.xlu0 %79 }
 0x106   :  { %87 = vst.msk [vmem:[%s185_s4 + $0x4] sm:$0xf] %vm70_vm1, %v80_v20 }

// kernel: decoder_layer_forward.9
= control target key start
LH: loop header
LB: loop body
LE: loop exit
PB: predicated region body
PF: predicated region fallthrough
CT: control target
= control target key end

     0   :  { %vm67_vm3 = vcmask 261120   ;;  %vm110_vm4 = vcmask 257024   ;;  %s212_s4 = inlined_call_operand.vmem [shape: bf16[32,32], index: 4, kind: input, shape index: {}]   ;;  %s213_s1 = inlined_call_operand.vmem [shape: f32[2,32], index: 1, kind: input, shape index: {}]   ;;  %s214_s3 = inlined_call_operand.vmem [shape: f32[1,32], index: 3, kind: input, shape index: {}]   ;;  %s215_s5 = inlined_call_operand.vmem [shape: f32[1,32], index: 5, kind: input, shape index: {}]   ;;  %s216_s0 = inlined_call_operand.vmem [shape: f32[16,32], index: 0, kind: input, shape index: {}]   ;;  %s217_s2 = inlined_call_operand.vmem [shape: f32[1,32], index: 2, kind: input, shape index: {}]   ;;  %s218_s7 = inlined_call_operand.vmem [shape: f32[16,32], index: 7, kind: output, shape index: {1}]   ;;  %s219_s6 = inlined_call_operand.vmem [shape: bf16[16,32], index: 6, kind: output, shape index: {0}]  }
   0x1   :  { %v131_v0 = vld [vmem:[%s212_s4 + $0x8] sm:$0xff]  ;;  %v28_v1 = vld [vmem:[%s213_s1] sm:$0x3] }
   0x2   :  { %100 = vmatpush.bf16.msra.mxu0 %v131_v0  ;;  %v130_v2 = vld [vmem:[%s212_s4] sm:$0xff]  ;;  %v31_v3 = vmul.f32 0.0625, %v28_v1  ;;  %v27_v17 = vld [vmem:[%s216_s0 + $0x8] sm:$0xff] }
   0x3   :  { %v26_v16 = vld [vmem:[%s216_s0] sm:$0xff] }
   0x4   :  { %v32_v4 = vmul.f32 %v31_v3, %v31_v3  ;;  %v37_v15 = vperm.slane %v31_v3, 0  ;;  %v29_v18 = vld [vmem:[%s217_s2] sm:$0x1] }
   0x5   :  { %v132_v24 = vld [vmem:[%s214_s3] ss:$0 sm:$0xff] }
   0x6   :  { %101 = vmatpush.bf16.msra.mxu0 %v130_v2  ;;  %v34_v5 = vrot.slane %v32_v4, 7  ;;  %v38_v20 = vsub.f32 %v26_v16, %v37_v15  ;;  %v39_v21 = vsub.f32 %v27_v17, %v37_v15  ;;  %v133_v30 = vld [vmem:[%s215_s5] ss:$0 sm:$0xff] }
   0x8   :  { %v36_v6 = vsub.f32 %v31_v3, %v34_v5 }
   0xa   :  { %v40_v7 = vadd.f32 1e-05, %v36_v6 }
   0xc   :  { %134 = vrsqrt.f32 %v40_v7  ;;  %vm47_vm0 = vweird.f32 %v40_v7 }
  0x12   :  { %v135_v8 = vpop.eup %134 }
  0x13   :  { %v42_v9 = vmul.f32 %v135_v8, %v40_v7  ;;  %vm48_vm1 = vweird.f32 %v135_v8 }
  0x14   :  { %vm49_vm2 = vmor %vm47_vm0, %vm48_vm1 }
  0x15   :  { %v43_v10 = vmul.f32 %v135_v8, %v42_v9 }
  0x17   :  { %v44_v11 = vmul.f32 0.5, %v43_v10 }
  0x19   :  { %v45_v12 = vsub.f32 1.5, %v44_v11 }
  0x1b   :  { %v46_v13 = vmul.f32 %v135_v8, %v45_v12 }
  0x1d   :  { %v50_v14 = vsel %vm49_vm2, %v135_v8, %v46_v13 }
  0x1e   :  { %52 = vst [vmem:[#allocation1] sm:$0xff] %v50_v14 }
  0x25   :  { %v54_v19 = vld [vmem:[#allocation1 + $0x1] ss:$9 sm:$0xff] }
  0x26   :  { %v56_v22 = vmul.f32 %v54_v19, %v29_v18 }
  0x28   :  { %v58_v23 = vperm.slane %v56_v22, 0 }
  0x2a   :  { %v60_v25 = vmul.f32 %v58_v23, %v38_v20  ;;  %v61_v26 = vmul.f32 %v58_v23, %v39_v21 }
  0x2c   :  { %v65_v27 = vadd.f32 %v132_v24, %v60_v25  ;;  %v66_v28 = vadd.f32 %v132_v24, %v61_v26 }
  0x2e   :  { %68 = vst.msk [vmem:[%s218_s7] sm:$0xff] %vm67_vm3, %v65_v27  ;;  %v70_v29 = vpack.c.bf16 %v66_v28, %v65_v27 }
  0x2f   :  { %69 = vst.msk [vmem:[%s218_s7 + $0x8] sm:$0xff] %vm67_vm3, %v66_v28 }
  0x30   :  { %129 = vmatmul.msk.bf16.vlgmr.msra.gmra.mxu0 %vm67_vm3, %v70_v29 }
  0xad   :  { %v103_v31 = vpop.f32.mrf.mxu0 }
  0xae   :  { %v104_v32 = vadd.f32 %v133_v30, %v103_v31 }
  0xb0   :  { %v108_v33 = vpack.c.bf16 %v104_v32, %v104_v32 }
  0xb2   :  { %111 = vst.msk [vmem:[%s219_s6] sm:$0xf] %vm110_vm4, %v108_v33 }
  0xb5   :  { %v105_v34 = vpop.f32.mrf.mxu0 }
  0xb6   :  { %v106_v35 = vadd.f32 %v133_v30, %v105_v34 }
  0xb8   :  { %v109_v36 = vpack.c.bf16 %v106_v35, %v106_v35 }
  0xba   :  { %112 = vst.msk [vmem:[%s219_s6 + $0x4] sm:$0xf] %vm110_vm4, %v109_v36 }

// kernel: decoder_layer_forward.7
= control target key start
LH: loop header
LB: loop body
LE: loop exit
PB: predicated region body
PF: predicated region fallthrough
CT: control target
= control target key end

     0   :  { %vm41_vm0 = vcmask 261120   ;;  %vm61_vm1 = vcmask 257024   ;;  %s108_s29 = smov 64   ;;  %s179_s1 = inlined_call_operand.vmem [shape: bf16[32,96], index: 1, kind: input, shape index: {}]   ;;  %s180_s0 = inlined_call_operand.vmem [shape: f32[16,32], index: 0, kind: input, shape index: {}]   ;;  %s181_s2 = inlined_call_operand.vmem [shape: f32[1,96], index: 2, kind: input, shape index: {}]   ;;  %s182_s3 = inlined_call_operand.vmem [shape: bf16[16,32], index: 3, kind: output, shape index: {0}]   ;;  %s183_s5 = inlined_call_operand.vmem [shape: bf16[16,32], index: 5, kind: output, shape index: {2}]   ;;  %s184_s4 = inlined_call_operand.vmem [shape: bf16[16,32], index: 4, kind: output, shape index: {1}]  }
   0x1   :  { %v104_v0 = vld [vmem:[%s179_s1 + $0x8] sm:$0xff]  ;;  %v103_v1 = vld [vmem:[%s179_s1] sm:$0xff] }
   0x2   :  { %51 = vmatpush.bf16.msra.mxu0 %v104_v0  ;;  %v18_v2 = vld [vmem:[%s180_s0] sm:$0xff]  ;;  %v19_v3 = vld [vmem:[%s180_s0 + $0x8] sm:$0xff]  ;;  %s109_s0 = smov 96  }
   0x3   :  { %v20_v4 = vpack.c.bf16 %v19_v3, %v18_v2  ;;  %v107_v5 = vld [vmem:[%s181_s2] ss:$0 sm:$0xff] }
   0x6   :  { %52 = vmatpush.bf16.msra.mxu0 %v103_v1 }
   0x9   :  { %102 = vmatmul.msk.bf16.vlgmr.msra.gmra.mxu0 %vm41_vm0, %v20_v4 }
  0x86   :  { %v54_v6 = vpop.f32.mrf.mxu0 }
  0x87   :  { %v55_v7 = vadd.f32 %v107_v5, %v54_v6 }
  0x89   :  { %v59_v8 = vpack.c.bf16 %v55_v7, %v55_v7 }
  0x8b   :  { %62 = vst.msk [vmem:[%s182_s3] sm:$0xf] %vm61_vm1, %v59_v8  ;;  %74 = vrot.lane.b32.xlu1 %v59_v8, %s108_s29  ;;  %66 = vrot.lane.b32.xlu0 %v59_v8, %s109_s0 }
  0x8e   :  { %v56_v9 = vpop.f32.mrf.mxu0 }
  0x8f   :  { %v57_v10 = vadd.f32 %v107_v5, %v56_v9 }
  0x91   :  { %v60_v11 = vpack.c.bf16 %v57_v10, %v57_v10 }
  0x93   :  { %63 = vst.msk [vmem:[%s182_s3 + $0x4] sm:$0xf] %vm61_vm1, %v60_v11  ;;  %76 = vrot.lane.b32.xlu1 %v60_v11, %s108_s29  ;;  %68 = vrot.lane.b32.xlu0 %v60_v11, %s109_s0 }
  0xfd   :  { %v75_v12 = vpop.permute.xlu1 %74  ;;  %v67_v13 = vpop.permute.xlu0 %66 }
  0xfe   :  { %80 = vst.msk [vmem:[%s183_s5] sm:$0xf] %vm61_vm1, %v75_v12 }
  0xff   :  { %72 = vst.msk [vmem:[%s184_s4] sm:$0xf] %vm61_vm1, %v67_v13 }
 0x105   :  { %v77_v14 = vpop.permute.xlu1 %76  ;;  %v69_v15 = vpop.permute.xlu0 %68 }
 0x106   :  { %81 = vst.msk [vmem:[%s183_s5 + $0x4] sm:$0xf] %vm61_vm1, %v77_v14 }
 0x107   :  { %73 = vst.msk [vmem:[%s184_s4 + $0x4] sm:$0xf] %vm61_vm1, %v69_v15 }

// kernel: decoder_layer_forward.8
= control target key start
LH: loop header
LB: loop body
LE: loop exit
PB: predicated region body
PF: predicated region fallthrough
CT: control target
= control target key end

     0   :  { %s1493_s0 = inlined_call_operand.vmem [shape: bf16[2,4,8,8], index: 0, kind: input, shape index: {}]   ;;  %s1494_s1 = inlined_call_operand.vmem [shape: bf16[2,4,8,8], index: 1, kind: input, shape index: {}]   ;;  %s1495_s2 = inlined_call_operand.vmem [shape: bf16[2,4,8,8], index: 2, kind: input, shape index: {}]   ;;  %s1496_s3 = inlined_call_operand.vmem [shape: f32[2,8,32], index: 3, kind: input, shape index: {}]   ;;  %s1497_s4 = inlined_call_operand.vmem [shape: bf16[4,8,32], index: 4, kind: input, shape index: {}]   ;;  %s1498_s5 = inlined_call_operand.vmem [shape: f32[1,32], index: 5, kind: input, shape index: {}]   ;;  %s1499_s6 = inlined_call_operand.vmem [shape: f32[2,8,32], index: 6, kind: output, shape index: {0}]   ;;  %s1500_s7 = inlined_call_operand.hbm [shape: f32[2,4,8,8], index: 7, kind: output, shape index: {1}]   ;;  %s1501_s8 = inlined_call_operand.vmem [shape: f32[2,2,32], index: 8, kind: output, shape index: {2}]  }
   0x1   :  { %1502 = sst [smem:[#allocation5_spill]] %s1493_s0 }
   0x2   :  { %1503 = sst [smem:[#allocation6_spill]] %s1494_s1 }
   0x3   :  { %1504 = sst [smem:[#allocation7_spill]] %s1495_s2 }
   0x4   :  { %14 = vsyncpa [#allocation3], 0 }
   0x5   :  { %16 = vsyncpa [#allocation3 + $0x1], 0  ;;  %s1293_s27 = smov 0   ;;  %s1295_s28 = smov 0  }
   0x6   :  { %s1297_s29 = smov 0   ;;  %s1299_s30 = smov 0  }
   0x7   :  { %s1301_s9 = smov 0   ;;  %s1303_s10 = smov 0  }
   0x8 LB: > { %s1044_s11 = sadd.s32 4294967295, %s1244_s10   ;;  %s1045_s12 = sadd.s32 4294967294, %s1244_s10   ;;  %s1244_s10 = sphi %s1303_s10, %s22_s10   ;;  %s1240_s9 = sphi %s1301_s9, %s1514_s9   ;;  %s1236_s30 = sphi %s1299_s30, %s1513_s30   ;;  %s1232_s29 = sphi %s1297_s29, %s1512_s29   ;;  %s1228_s28 = sphi %s1295_s28, %s1511_s28   ;;  %s1224_s27 = sphi %s1293_s27, %s1510_s27  }
   0x9   : > { %s34_s13 = sadd.s32 1, %s1240_s9  ;;  %s221_s14 = sadd.s32 1, %s1232_s29 }
   0xa   : > { %p36_p0 = scmp.ge.s32.totalorder %s34_s13, 2  ;;  %p231_p1 = scmp.ne.s32.totalorder %s1232_s29, %s1228_s28 }
   0xb   : > { %p232_p2 = scmp.eq.s32.totalorder %s1044_s11, 1  ;;  %p237_p3 = scmp.ne.s32.totalorder %s1228_s28, %s1224_s27 }
   0xc   : > { %s1516_s13 = smov (%p36_p0, %s34_s13), 0  ;;  %p238_p5 = scmp.eq.s32.totalorder %s1045_s12, 1 }
   0xd   : > { %p1333_p4 = por %p232_p2, %p231_p1  ;;  %s216_s16 = ssub.s32 %s1240_s9, %s1516_s13 }
   0xe   : > { %p1048_p6 = scmp.ge.s32.totalorder %s1244_s10, 1  ;;  %p219_p7 = scmp.eq.s32.totalorder %s216_s16, 0 }
   0xf   : > { %p1340_p8 = por %p238_p5, %p237_p3  ;;  %p327_p9 = scmp.lt.s32.totalorder %s1244_s10, 3 }
  0x10   : > { %s1346_s18 = scalar_select %p219_p7, %s1232_s29, %s221_s14  }
  0x11   : > { %p328_p10 = pnand %p1048_p6, %p327_p9 }
  0x12   : > { %p393_p11 = scmp.lt.s32.totalorder (!%p328_p10), %s1236_s30, 1  ;;  %s1507_s1 = sld [smem:[#allocation6_spill]] (!%p328_p10) }
  0x13   : > { %331 = sbr.rel (%p328_p10) target bundleno = 727 (0x2d7), region = 44  ;;  %s1508_s0 = sld [smem:[#allocation5_spill]] (!%p328_p10) }
  0x14   : > { %s1509_s2 = sld [smem:[#allocation7_spill]] (!%p328_p10)  ;;  %s383_s16 = sand.u32 (!%p328_p10), 1, %s1228_s28  }
  0x15   : > { %s843_s11 = scalar_lea.sflag (!%p328_p10), [#allocation3], %s383_s16 }
  0x18   : > { %s1350_s19 = scalar_select %p393_p11, %s1236_s30, 1  ;;  %vm452_vm0 = vcmask 64512   ;;  %vm644_vm1 = vcmask 1043456  }
  0x1a   : > { %s1353_s20 = sshll.u32 %s1350_s19, 4 }
  0x1b   : > { %s405_s23 = scalar_lea.vmem %s1507_s1, %s1353_s20  ;;  %s400_s26 = scalar_lea.vmem %s1508_s0, %s1353_s20 }
  0x1c   : > { %v448_v0 = vld [vmem:[%s405_s23] sm:$0xf]  ;;  %v450_v1 = vld [vmem:[%s405_s23 + $0x8] sm:$0xf]  ;;  %v451_v2 = vld [vmem:[%s405_s23 + $0xc] sm:$0xf]  ;;  %s410_s14 = scalar_lea.vmem %s1509_s2, %s1353_s20 }
  0x1d   : > { %v457_v3 = vsel %vm452_vm0, %v448_v0, 0  ;;  %v495_v4 = vsel %vm452_vm0, %v450_v1, 0  ;;  %v514_v5 = vsel %vm452_vm0, %v451_v2, 0  ;;  %v1084_v6 = vld [vmem:[%s400_s26] sm:$0xff]   ;;  %v1091_v7 = vld [vmem:[%s400_s26 + $0x8] sm:$0xff]   ;;  %s1049_s20 = sshll.u32 %s383_s16, 5 }
  0x1e   : > { %466 = vmatpush.bf16.xpose.msra.mxu0 %v457_v3  ;;  %504 = vmatpush.bf16.xpose.msra.mxu2 %v495_v4  ;;  %v1085_v8 = vunpack.c.l.bf16 %v1084_v6  ;;  %v1089_v9 = vunpack.c.l.bf16 %v1091_v7  ;;  %v1090_v10 = vunpack.c.h.bf16 %v1091_v7  ;;  %v449_v11 = vld [vmem:[%s405_s23 + $0x4] sm:$0xf]  ;;  %v1086_v12 = vunpack.c.h.bf16 %v1084_v6  ;;  %v637_v54 = vld [vmem:[%s410_s14] sm:$0xf]  ;;  %v639_v56 = vld [vmem:[%s410_s14 + $0x8] sm:$0xf] }
  0x1f   : > { %523 = vmatpush.bf16.xpose.msra.mxu3 %v514_v5  ;;  %v476_v13 = vsel %vm452_vm0, %v449_v11, 0  ;;  %v646_v55 = vsel %vm644_vm1, %v637_v54, 0  ;;  %v684_v57 = vsel %vm644_vm1, %v639_v56, 0  ;;  %v638_v58 = vld [vmem:[%s410_s14 + $0x4] sm:$0xf]  ;;  %s1403_s21 = scalar_lea.vmem [#allocation2], %s1049_s20 }
  0x20   : > { %v440_v14 = vmul.f32 0.35355338, %v1085_v8  ;;  %v442_v15 = vmul.f32 0.35355338, %v1089_v9  ;;  %v443_v16 = vmul.f32 0.35355338, %v1090_v10  ;;  %485 = vmatpush.bf16.xpose.msra.mxu1 %v476_v13 }
  0x21   : > { %v441_v17 = vmul.f32 0.35355338, %v1086_v12  ;;  %v665_v59 = vsel %vm644_vm1, %v638_v58, 0  ;;  %v640_v60 = vld [vmem:[%s410_s14 + $0xc] sm:$0xf]  ;;  %s1082_s20 = sshll.u32 %s1236_s30, 5 }
  0x22   : > { %v444_v18 = vpack.c.bf16 %v440_v14, %v440_v14  ;;  %v446_v19 = vpack.c.bf16 %v442_v15, %v442_v15  ;;  %v447_v20 = vpack.c.bf16 %v443_v16, %v443_v16  ;;  %v703_v62 = vsel %vm644_vm1, %v640_v60, 0  ;;  %v1068_v56 = vld [vmem:[%s1497_s4 + $0x4] sm:$0xf]  ;;  %s863_s24 = scalar_lea.hbm %s1500_s7, %s1082_s20  ;;  %s864_s25 = sshll.u32 %s1403_s21, 4  ;;  %s865_s25 = int_to_ptr.vmem [resolvable:$true] %s864_s25 }
  0x23   : > { %v445_v21 = vpack.c.bf16 %v441_v17, %v441_v17  ;;  %s866_s26 = sshll.u32 %s863_s24, 4  ;;  %s1186_s30 = scalar_lea.hbm %s1500_s7, 64  ;;  %s867_s26 = int_to_ptr.hbm [resolvable:$true] %s866_s26 }
  0x24   : > { %s1180_s12 = sshra.s32 %s867_s26, 4  ;;  %s1181_s12 = int_to_ptr.hbm [resolvable:$true] %s1180_s12 }
  0x25   : > { %1059 = vmatmul.msk.bf16.vlgmr.msra.gmra.mxu0 %vm452_vm0, %v444_v18  ;;  %1061 = vmatmul.msk.bf16.vlgmr.msra.gmra.mxu2 %vm452_vm0, %v446_v19  ;;  %s1182_s14 = scalar_lea.hbm %s1181_s12, 32  ;;  %p1187_p1 = scmp.lt.s32.totalorder %s1181_s12, %s1500_s7 }
  0x26   : > { %1062 = vmatmul.msk.bf16.vlgmr.msra.gmra.mxu3 %vm452_vm0, %v447_v20  ;;  %655 = vmatpush.bf16.msrb.mxu0 %v646_v55  ;;  %p1183_p12 = scmp.ne.s32.totalorder %s1181_s12, %s1182_s14  ;;  %p1188_p2 = scmp.lt.s32.totalorder %s1186_s30, %s1182_s14 }
  0x27   : > { %1060 = vmatmul.msk.bf16.vlgmr.msra.gmra.mxu1 %vm452_vm0, %v445_v21  ;;  %693 = vmatpush.bf16.msrb.mxu2 %v684_v57  ;;  %v753_v57 = vsel %vm644_vm1, %v1068_v56, 0 }
  0x28   : > { %674 = vmatpush.bf16.msrb.mxu1 %v665_v59  ;;  %712 = vmatpush.bf16.msrb.mxu3 %v703_v62  ;;  %p1184_p13 = pnand %p1183_p12, %p1333_p4  ;;  %p1189_p3 = por %p1188_p2, %p1187_p1 }
  0x2a   : > { %p1185_p0 = pneg %p1184_p13 }
  0x2c   : > { %762 = vmatpush.bf16.msra.mxu1 %v753_v57  ;;  %p1190_p5 = pnand %p1189_p3, %p1185_p0 }
  0xa2   : > { %v468_v22 = vpop.f32.mrf.mxu0 }
  0xa3   : > { %v529_v23 = vsel %vm452_vm0, %v468_v22, -inf }
  0xa4   : > { %530 = vmax.xlane.f32.xlu1 %v529_v23  ;;  %v487_v24 = vpop.f32.mrf.mxu1 }
  0xa5   : > { %v532_v28 = vsel %vm452_vm0, %v487_v24, -inf }
  0xa8   : > { %v506_v25 = vpop.f32.mrf.mxu2 }
  0xa9   : > { %v525_v26 = vpop.f32.mrf.mxu3  ;;  %v535_v27 = vsel %vm452_vm0, %v506_v25, -inf }
  0xaa   : > { %536 = vmax.xlane.f32.xlu0 %v535_v27  ;;  %v470_v29 = vpop.f32.mrf.mxu0  ;;  %v538_v31 = vsel %vm452_vm0, %v525_v26, -inf }
  0xac   : > { %533 = vmax.xlane.f32.xlu1 %v532_v28  ;;  %v489_v30 = vpop.f32.mrf.mxu1 }
  0xb0   : > { %v508_v32 = vpop.f32.mrf.mxu2 }
  0xb1   : > { %v527_v33 = vpop.f32.mrf.mxu3 }
  0xb2   : > { %539 = vmax.xlane.f32.xlu0 %v538_v31 }
 0x117   : > { %v531_v34 = vpop.xlane.xlu1 %530 }
 0x118   : > { %v541_v35 = vsub.f32 %v468_v22, %v531_v34 }
 0x11a   : > { %v545_v36 = vmul.f32 1.442695, %v541_v35 }
 0x11c   : > { %1150 = vpow2.f32 %v545_v36 }
 0x11d   : > { %v537_v37 = vpop.xlane.xlu0 %536 }
 0x11e   : > { %v543_v38 = vsub.f32 %v506_v25, %v537_v37 }
 0x11f   : > { %v534_v39 = vpop.xlane.xlu1 %533 }
 0x120   : > { %v549_v40 = vmul.f32 1.442695, %v543_v38  ;;  %v542_v41 = vsub.f32 %v487_v24, %v534_v39 }
 0x122   : > { %v1375_v42 = vpop.eup %1150  ;;  %1152 = vpow2.f32 %v549_v40  ;;  %v547_v43 = vmul.f32 1.442695, %v542_v41 }
 0x123   : > { %v553_v44 = vsel %vm452_vm0, %v1375_v42, 0.0 }
 0x124   : > { %1154 = vpow2.f32 %v547_v43  ;;  %554 = vadd.xlane.f32.xlu0 %v553_v44 }
 0x125   : > { %v540_v45 = vpop.xlane.xlu0 %539 }
 0x126   : > { %v544_v46 = vsub.f32 %v525_v26, %v540_v45 }
 0x128   : > { %v1379_v47 = vpop.eup %1152  ;;  %v551_v48 = vmul.f32 1.442695, %v544_v46 }
 0x129   : > { %v559_v49 = vsel %vm452_vm0, %v1379_v47, 0.0 }
 0x12a   : > { %v1383_v50 = vpop.eup %1154  ;;  %1156 = vpow2.f32 %v551_v48  ;;  %560 = vadd.xlane.f32.xlu2 %v559_v49 }
 0x12b   : > { %v556_v51 = vsel %vm452_vm0, %v1383_v50, 0.0 }
 0x12c   : > { %557 = vadd.xlane.f32.xlu1 %v556_v51 }
 0x130   : > { %v1387_v52 = vpop.eup %1156 }
 0x131   : > { %v562_v53 = vsel %vm452_vm0, %v1387_v52, 0.0 }
 0x132   : > { %563 = vadd.xlane.f32.xlu2 %v562_v53  ;;  %v1070_v53 = vld [vmem:[%s1497_s4 + $0x8] sm:$0xf] }
 0x133   : > { %v776_v54 = vsel %vm644_vm1, %v1070_v53, 0 }
 0x134   : > { %785 = vmatpush.bf16.msra.mxu2 %v776_v54 }
 0x197   : > { %v555_v61 = vpop.xlane.xlu0 %554 }
 0x198   : > { %1158 = vrcp.f32 %v555_v61  ;;  %v576_v4 = vand.u32 2147483648, %v555_v61  ;;  %v574_v6 = vand.u32 2147483647, %v555_v61  ;;  %vm570_vm3 = vweird.f32 %v555_v61 }
 0x19a   : > { %v577_v12 = vor.u32 1.1754944e-38, %v576_v4  ;;  %vm575_vm5 = vcmp.eq.f32.partialorder %v574_v6, 8.507059e+37 }
 0x19d   : > { %v561_v63 = vpop.xlane.xlu2 %560 }
 0x19e   : > { %v1159_v0 = vpop.eup %1158  ;;  %1160 = vrcp.f32 %v561_v63  ;;  %v604_v17 = vand.u32 2147483647, %v561_v63  ;;  %v606_v18 = vand.u32 2147483648, %v561_v63  ;;  %vm600_vm7 = vweird.f32 %v561_v63 }
 0x19f   : > { %v566_v1 = vmul.f32 %v1159_v0, %v555_v61  ;;  %v558_v2 = vpop.xlane.xlu1 %557  ;;  %vm571_vm2 = vweird.f32 %v1159_v0 }
 0x1a0   : > { %1162 = vrcp.f32 %v558_v2  ;;  %vm572_vm4 = vmor %vm570_vm3, %vm571_vm2  ;;  %v589_v22 = vand.u32 2147483647, %v558_v2  ;;  %v591_v23 = vand.u32 2147483648, %v558_v2  ;;  %vm605_vm10 = vcmp.eq.f32.partialorder %v604_v17, 8.507059e+37 }
 0x1a1   : > { %v567_v3 = vsub.f32 1.0, %v566_v1  ;;  %v607_v28 = vor.u32 1.1754944e-38, %v606_v18  ;;  %vm585_vm11 = vweird.f32 %v558_v2 }
 0x1a2   : > { %v592_v32 = vor.u32 1.1754944e-38, %v591_v23  ;;  %vm590_vm13 = vcmp.eq.f32.partialorder %v589_v22, 8.507059e+37 }
 0x1a3   : > { %v568_v5 = vmul.f32 %v1159_v0, %v567_v3 }
 0x1a4   : > { %v1161_v7 = vpop.eup %1160 }
 0x1a5   : > { %v569_v8 = vadd.f32 %v1159_v0, %v568_v5  ;;  %v596_v9 = vmul.f32 %v1161_v7, %v561_v63  ;;  %v564_v10 = vpop.xlane.xlu2 %563  ;;  %vm601_vm6 = vweird.f32 %v1161_v7 }
 0x1a6   : > { %v1163_v11 = vpop.eup %1162  ;;  %1164 = vrcp.f32 %v564_v10  ;;  %vm602_vm9 = vmor %vm600_vm7, %vm601_vm6  ;;  %v619_v38 = vand.u32 2147483647, %v564_v10  ;;  %v621_v39 = vand.u32 2147483648, %v564_v10  ;;  %vm615_vm15 = vweird.f32 %v564_v10 }
 0x1a7   : > { %v573_v13 = vsel %vm572_vm4, %v1159_v0, %v569_v8  ;;  %v597_v14 = vsub.f32 1.0, %v596_v9  ;;  %v581_v15 = vmul.f32 %v1163_v11, %v558_v2  ;;  %vm586_vm8 = vweird.f32 %v1163_v11 }
 0x1a8   : > { %v578_v16 = vsel %vm575_vm5, %v577_v12, %v573_v13  ;;  %vm587_vm12 = vmor %vm585_vm11, %vm586_vm8  ;;  %v622_v45 = vor.u32 1.1754944e-38, %v621_v39  ;;  %vm620_vm3 = vcmp.eq.f32.partialorder %v619_v38, 8.507059e+37 }
 0x1a9   : > { %v598_v19 = vmul.f32 %v1161_v7, %v597_v14  ;;  %v582_v20 = vsub.f32 1.0, %v581_v15  ;;  %v625_v21 = vmul.f32 %v1375_v42, %v578_v16 }
 0x1ab   : > { %v599_v24 = vadd.f32 %v1161_v7, %v598_v19  ;;  %v583_v25 = vmul.f32 %v1163_v11, %v582_v20  ;;  %629 = vst.msk [vmem:[%s1403_s21] sm:$0xff] %vm452_vm0, %v625_v21  ;;  %v633_v26 = vpack.c.bf16 %v625_v21, %v625_v21 }
 0x1ac   : > { %v1165_v27 = vpop.eup %1164 }
 0x1ad   : > { %v603_v29 = vsel %vm602_vm9, %v1161_v7, %v599_v24  ;;  %v584_v30 = vadd.f32 %v1163_v11, %v583_v25  ;;  %v611_v31 = vmul.f32 %v1165_v27, %v564_v10  ;;  %1063 = vmatmul.msk.bf16.vlgmr.msrb.gmra.mxu0 %vm452_vm0, %v633_v26  ;;  %vm616_vm14 = vweird.f32 %v1165_v27 }
 0x1ae   : > { %v608_v33 = vsel %vm605_vm10, %v607_v28, %v603_v29  ;;  %vm617_vm2 = vmor %vm615_vm15, %vm616_vm14 }
 0x1af   : > { %v588_v34 = vsel %vm587_vm12, %v1163_v11, %v584_v30  ;;  %v612_v35 = vsub.f32 1.0, %v611_v31  ;;  %v627_v36 = vmul.f32 %v1379_v47, %v608_v33 }
 0x1b0   : > { %v593_v37 = vsel %vm590_vm13, %v592_v32, %v588_v34 }
 0x1b1   : > { %v613_v40 = vmul.f32 %v1165_v27, %v612_v35  ;;  %631 = vst.msk [vmem:[%s1403_s21 + $0x10] sm:$0xff] %vm452_vm0, %v627_v36  ;;  %v635_v41 = vpack.c.bf16 %v627_v36, %v627_v36  ;;  %v626_v42 = vmul.f32 %v1383_v50, %v593_v37  ;;  %v725_v50 = vld [vmem:[%s1497_s4] sm:$0xf] }
 0x1b2   : > { %v730_v51 = vsel %vm644_vm1, %v725_v50, 0 }
 0x1b3   : > { %v614_v43 = vadd.f32 %v1165_v27, %v613_v40  ;;  %1065 = vmatmul.msk.bf16.vlgmr.msrb.gmra.mxu2 %vm452_vm0, %v635_v41  ;;  %630 = vst.msk [vmem:[%s1403_s21 + $0x8] sm:$0xff] %vm452_vm0, %v626_v42  ;;  %v634_v44 = vpack.c.bf16 %v626_v42, %v626_v42  ;;  %739 = vmatpush.bf16.msra.mxu0 %v730_v51 }
 0x1b5   : > { %v618_v46 = vsel %vm617_vm2, %v1165_v27, %v614_v43  ;;  %1064 = vmatmul.msk.bf16.vlgmr.msrb.gmra.mxu1 %vm452_vm0, %v634_v44 }
 0x1b6   : > { %v623_v47 = vsel %vm620_vm3, %v622_v45, %v618_v46 }
 0x1b7   : > { %v628_v48 = vmul.f32 %v1387_v52, %v623_v47  ;;  %v1072_v52 = vld [vmem:[%s1497_s4 + $0xc] sm:$0xf] }
 0x1b8   : > { %v799_v55 = vsel %vm644_vm1, %v1072_v52, 0 }
 0x1b9   : > { %632 = vst.msk [vmem:[%s1403_s21 + $0x18] sm:$0xff] %vm452_vm0, %v628_v48  ;;  %v636_v49 = vpack.c.bf16 %v628_v48, %v628_v48  ;;  %808 = vmatpush.bf16.msra.mxu3 %v799_v55 }
 0x1bb   : > { %1066 = vmatmul.msk.bf16.vlgmr.msrb.gmra.mxu3 %vm452_vm0, %v636_v49 }
 0x22a   : > { %v657_v58 = vpop.f32.mrf.mxu0 }
 0x22b   : > { %v724_v59 = vpack.c.bf16 %v657_v58, %v657_v58 }
 0x22d   : > { %1067 = vmatmul.msk.bf16.vlgmr.msra.gmra.mxu0 %vm452_vm0, %v724_v59 }
 0x232   : > { %v659_v60 = vpop.f32.mrf.mxu0  ;;  %v676_v61 = vpop.f32.mrf.mxu1 }
 0x233   : > { %v746_v62 = vpack.c.bf16 %v676_v61, %v676_v61 }
 0x235   : > { %1069 = vmatmul.msk.bf16.vlgmr.msra.gmra.mxu1 %vm452_vm0, %v746_v62 }
 0x236   : > { %v695_v63 = vpop.f32.mrf.mxu2 }
 0x237   : > { %v769_v0 = vpack.c.bf16 %v695_v63, %v695_v63 }
 0x239   : > { %1071 = vmatmul.msk.bf16.vlgmr.msra.gmra.mxu2 %vm452_vm0, %v769_v0 }
 0x23a   : > { %v678_v1 = vpop.f32.mrf.mxu1 }
 0x23e   : > { %v697_v2 = vpop.f32.mrf.mxu2  ;;  %v714_v3 = vpop.f32.mrf.mxu3 }
 0x23f   : > { %v792_v4 = vpack.c.bf16 %v714_v3, %v714_v3 }
 0x241   : > { %1073 = vmatmul.msk.bf16.vlgmr.msra.gmra.mxu3 %vm452_vm0, %v792_v4 }
 0x246   : > { %v716_v5 = vpop.f32.mrf.mxu3 }
 0x247   : > { %1193 = shalt.err (!%p1190_p5)
}
 0x248   : > { %s1246_s16 = smov 128   ;;  %s1247_s21 = smov 8   ;;  %v1149_v9 = vld [vmem:[%s1498_s5] ss:$0 sm:$0xff]  ;;  %vm815_vm0 = vcmask 261120   ;;  %vm824_vm1 = vcmask 253952  }
 0x249   : > { %1092 = dma.vmem_to_hbm [thread:$0]  (%p1333_p4), %s865_s25, 512, %s867_s26, %s843_s11, %s1246_s16, %s1246_s16, %s1247_s21  }
 0x24a   : > { %s1056_s20 = sshll.u32 %s1350_s19, 3  ;;  %s1058_s11 = sshll.u32 %s1350_s19, 1 }
 0x24b   : > { %s417_s23 = scalar_lea.vmem %s1496_s3, %s1056_s20  ;;  %s424_s26 = scalar_lea.vmem %s1499_s6, %s1056_s20 }
 0x24c   : > { %v718_v10 = vld [vmem:[%s417_s23] sm:$0xff]  ;;  %s429_s30 = scalar_lea.vmem %s1501_s8, %s1058_s11 }
 0x24d   : > { %v723_v12 = vadd.f32 %v1149_v9, %v718_v10 }
 0x2aa   : > { %v741_v6 = vpop.f32.mrf.mxu0 }
 0x2ab   : > { %v745_v14 = vadd.f32 %v741_v6, %v723_v12 }
 0x2b2   : > { %v743_v7 = vpop.f32.mrf.mxu0  ;;  %v764_v8 = vpop.f32.mrf.mxu1 }
 0x2b3   : > { %v768_v15 = vadd.f32 %v764_v8, %v745_v14 }
 0x2ba   : > { %v766_v11 = vpop.f32.mrf.mxu1 }
 0x2bc   : > { %v787_v13 = vpop.f32.mrf.mxu2 }
 0x2bd   : > { %v791_v16 = vadd.f32 %v787_v13, %v768_v15 }
 0x2c4   : > { %v789_v17 = vpop.f32.mrf.mxu2  ;;  %v810_v18 = vpop.f32.mrf.mxu3 }
 0x2c5   : > { %v814_v19 = vadd.f32 %v810_v18, %v791_v16 }
 0x2c7   : > { %816 = vst.msk [vmem:[%s424_s26] sm:$0xff] %vm815_vm0, %v814_v19  ;;  %v817_v20 = vsel %vm815_vm0, %v814_v19, 0.0  ;;  %v826_v21 = vmul.f32 %v814_v19, %v814_v19 }
 0x2c8   : > { %v818_v22 = vrot.slane %v817_v20, 4 }
 0x2c9   : > { %v827_v23 = vsel %vm815_vm0, %v826_v21, 0.0 }
 0x2ca   : > { %v819_v24 = vadd.f32 %v818_v22, %v817_v20  ;;  %v828_v25 = vrot.slane %v827_v23, 4 }
 0x2cc   : > { %v820_v26 = vrot.slane %v819_v24, 2  ;;  %v829_v27 = vadd.f32 %v828_v25, %v827_v23  ;;  %v812_v28 = vpop.f32.mrf.mxu3 }
 0x2ce   : > { %v821_v29 = vadd.f32 %v820_v26, %v819_v24  ;;  %v830_v30 = vrot.slane %v829_v27, 2 }
 0x2d0   : > { %v822_v31 = vrot.slane %v821_v29, 1  ;;  %v831_v32 = vadd.f32 %v830_v30, %v829_v27 }
 0x2d2   : > { %v823_v33 = vadd.f32 %v822_v31, %v821_v29  ;;  %v832_v34 = vrot.slane %v831_v32, 1 }
 0x2d4   : > { %825 = vst.msk [vmem:[%s429_s30] sm:$0x1] %vm824_vm1, %v823_v33  ;;  %v833_v35 = vadd.f32 %v832_v34, %v831_v32 }
 0x2d6   : > { %834 = vst.msk [vmem:[%s429_s30 + $0x1] sm:$0x1] %vm824_vm1, %v833_v35 }
 0x2d7 PF: > { %p1098_p4 = scmp.ge.s32.totalorder %s1244_s10, 2  ;;  %s895_s19 = sand.u32 1, %s1224_s27  }
 0x2d8   : > { %s896_s22 = scalar_lea.sflag [#allocation3], %s895_s19 }
 0x2d9   : > { %p1095_p6 = pnand %p1098_p4, %p1340_p8 }
 0x2db   : > { %p1096_p7 = pneg %p1095_p6 }
 0x2dd   : > { %1219 = dma.done.wait (%p1096_p7), %s896_s22, 512  }
 0x2de   : > { %1221 = vsyncadd (%p1096_p7), %s896_s22, 4294966784  ;;  %s22_s10 = sadd.s32 1, %s1244_s10   ;;  %s1510_s27 = smov %s1228_s28 }
 0x2df   : > { %p19_p9 = scmp.ge.s32.totalorder %s22_s10, 4   ;;  %s1511_s28 = smov %s1232_s29 }
 0x2e0   : > { %s1512_s29 = smov %s1346_s18  ;;  %s1513_s30 = smov %s1240_s9 }
 0x2e1   : > { %s1514_s9 = smov %s1516_s13  ;;  %21 = sbr.rel (!%p19_p9) target bundleno = 8 (0x8), region = 115 }
 0x2e6   :  { %910 = vsyncpa [#allocation3], 1 }
 0x2e7   :  { %912 = vsyncpa [#allocation3 + $0x1], 1 }

// kernel: decoder_layer_forward.13
= control target key start
LH: loop header
LB: loop body
LE: loop exit
PB: predicated region body
PF: predicated region fallthrough
CT: control target
= control target key end

     0   :  { %s158_s0 = inlined_call_operand.vmem [shape: f32[16,32], index: 0, kind: input, shape index: {}]   ;;  %s159_s1 = inlined_call_operand.vmem [shape: f32[2,32], index: 1, kind: input, shape index: {}]   ;;  %s160_s2 = inlined_call_operand.vmem [shape: f32[1,32], index: 2, kind: input, shape index: {}]   ;;  %s161_s3 = inlined_call_operand.vmem [shape: f32[1,32], index: 3, kind: input, shape index: {}]   ;;  %s162_s4 = inlined_call_operand.hbm [shape: f32[16,32], index: 4, kind: output, shape index: {}]  }
   0x1   :  { %v20_v0 = vld [vmem:[%s159_s1] sm:$0x3] }
   0x2   :  { %v23_v1 = vmul.f32 0.0625, %v20_v0 }
   0x3   :  { %9 = vsyncpa [#allocation3], 0  ;;  %v18_v14 = vld [vmem:[%s158_s0] sm:$0xff]  ;;  %v19_v16 = vld [vmem:[%s158_s0 + $0x8] sm:$0xff]  ;;  %s112_s24 = smov [#allocation2]   ;;  %s68_s28 = sshll.u32 %s162_s4, 4  ;;  %s69_s28 = int_to_ptr.hbm [resolvable:$true] %s68_s28 }
   0x4   :  { %v24_v2 = vmul.f32 %v23_v1, %v23_v1  ;;  %v29_v13 = vperm.slane %v23_v1, 0  ;;  %v21_v15 = vld [vmem:[%s160_s2] sm:$0x1]  ;;  %s66_s25 = sshll.u32 %s112_s24, 4  ;;  %vm59_vm3 = vcmask 261120   ;;  %s113_s0 = smov 128   ;;  %s67_s25 = int_to_ptr.vmem [resolvable:$true] %s66_s25 }
   0x5   :  { %v83_v22 = vld [vmem:[%s161_s3] ss:$0 sm:$0xff]  ;;  %s114_s2 = smov 8  }
   0x6   :  { %v26_v3 = vrot.slane %v24_v2, 7  ;;  %v30_v18 = vsub.f32 %v18_v14, %v29_v13  ;;  %v31_v20 = vsub.f32 %v19_v16, %v29_v13 }
   0x8   :  { %v28_v4 = vsub.f32 %v23_v1, %v26_v3 }
   0xa   :  { %v32_v5 = vadd.f32 1e-05, %v28_v4 }
   0xc   :  { %84 = vrsqrt.f32 %v32_v5  ;;  %vm39_vm0 = vweird.f32 %v32_v5 }
  0x12   :  { %v85_v6 = vpop.eup %84 }
  0x13   :  { %v34_v7 = vmul.f32 %v85_v6, %v32_v5  ;;  %vm40_vm1 = vweird.f32 %v85_v6 }
  0x14   :  { %vm41_vm2 = vmor %vm39_vm0, %vm40_vm1 }
  0x15   :  { %v35_v8 = vmul.f32 %v85_v6, %v34_v7 }
  0x17   :  { %v36_v9 = vmul.f32 0.5, %v35_v8 }
  0x19   :  { %v37_v10 = vsub.f32 1.5, %v36_v9 }
  0x1b   :  { %v38_v11 = vmul.f32 %v85_v6, %v37_v10 }
  0x1d   :  { %v42_v12 = vsel %vm41_vm2, %v85_v6, %v38_v11 }
  0x1e   :  { %44 = vst [vmem:[#allocation1] sm:$0xff] %v42_v12 }
  0x25   :  { %v46_v17 = vld [vmem:[#allocation1 + $0x1] ss:$9 sm:$0xff] }
  0x26   :  { %v48_v19 = vmul.f32 %v46_v17, %v21_v15 }
  0x28   :  { %v50_v21 = vperm.slane %v48_v19, 0 }
  0x2a   :  { %v52_v23 = vmul.f32 %v50_v21, %v30_v18  ;;  %v53_v24 = vmul.f32 %v50_v21, %v31_v20 }
  0x2c   :  { %v57_v25 = vadd.f32 %v83_v22, %v52_v23  ;;  %v58_v26 = vadd.f32 %v83_v22, %v53_v24 }
  0x2e   :  { %60 = vst.msk [vmem:[#allocation2] sm:$0xff] %vm59_vm3, %v57_v25 }
  0x2f   :  { %61 = vst.msk [vmem:[#allocation2 + $0x8] sm:$0xff] %vm59_vm3, %v58_v26 }
  0x30   :  { %74 = dma.vmem_to_hbm [thread:$0]  %s67_s25, 256, %s69_s28, [#allocation3], %s113_s0, %s113_s0, %s114_s2  }
  0x31   :  { %110 = dma.done.wait [#allocation3], 256  }
  0x32   :  { %111 = vsyncadd [#allocation3], 4294967040 }
  0x33   :  { %79 = vsyncpa [#allocation3], 1 }

// kernel: decoder_layer_forward.12
= control target key start
LH: loop header
LB: loop body
LE: loop exit
PB: predicated region body
PF: predicated region fallthrough
CT: control target
= control target key end

     0   :  { %vm94_vm3 = vcmask 261120   ;;  %vm210_vm4 = vcmask 253952   ;;  %s408_s4 = inlined_call_operand.vmem [shape: bf16[32,128], index: 4, kind: input, shape index: {}]   ;;  %s409_s1 = inlined_call_operand.vmem [shape: f32[2,32], index: 1, kind: input, shape index: {}]   ;;  %s410_s3 = inlined_call_operand.vmem [shape: f32[1,32], index: 3, kind: input, shape index: {}]   ;;  %s411_s5 = inlined_call_operand.vmem [shape: f32[1,128], index: 5, kind: input, shape index: {}]   ;;  %s412_s6 = inlined_call_operand.vmem [shape: bf16[128,32], index: 6, kind: input, shape index: {}]   ;;  %s413_s0 = inlined_call_operand.vmem [shape: f32[16,32], index: 0, kind: input, shape index: {}]   ;;  %s414_s2 = inlined_call_operand.vmem [shape: f32[1,32], index: 2, kind: input, shape index: {}]   ;;  %s415_s7 = inlined_call_operand.vmem [shape: f32[1,32], index: 7, kind: input, shape index: {}]   ;;  %s416_s8 = inlined_call_operand.vmem [shape: f32[16,32], index: 8, kind: output, shape index: {0}]   ;;  %s417_s9 = inlined_call_operand.vmem [shape: f32[1,2,32], index: 9, kind: output, shape index: {1}]  }
   0x1   :  { %v274_v0 = vld [vmem:[%s408_s4 + $0x8] sm:$0xff]  ;;  %v34_v1 = vld [vmem:[%s409_s1] sm:$0x3]  ;;  %v282_v8 = vld [vmem:[%s412_s6 + $0x38] sm:$0xff] }
   0x2   :  { %104 = vmatpush.bf16.msra.mxu0 %v274_v0  ;;  %v273_v2 = vld [vmem:[%s408_s4] sm:$0xff]  ;;  %v37_v3 = vmul.f32 0.0625, %v34_v1  ;;  %183 = vmatpush.bf16.msra.mxu1 %v282_v8  ;;  %v281_v10 = vld [vmem:[%s412_s6 + $0x30] sm:$0xff]  ;;  %v280_v13 = vld [vmem:[%s412_s6 + $0x28] sm:$0xff] }
   0x3   :  { %v279_v16 = vld [vmem:[%s412_s6 + $0x20] sm:$0xff]  ;;  %v33_v21 = vld [vmem:[%s413_s0 + $0x8] sm:$0xff]  ;;  %v278_v34 = vld [vmem:[%s412_s6 + $0x18] sm:$0xff] }
   0x4   :  { %v38_v4 = vmul.f32 %v37_v3, %v37_v3  ;;  %v43_v19 = vperm.slane %v37_v3, 0  ;;  %v32_v20 = vld [vmem:[%s413_s0] sm:$0xff]  ;;  %v277_v35 = vld [vmem:[%s412_s6 + $0x10] sm:$0xff]  ;;  %v276_v36 = vld [vmem:[%s412_s6 + $0x8] sm:$0xff] }
   0x5   :  { %v35_v22 = vld [vmem:[%s414_s2] sm:$0x1] }
   0x6   :  { %105 = vmatpush.bf16.msra.mxu0 %v273_v2  ;;  %v40_v5 = vrot.slane %v38_v4, 7  ;;  %184 = vmatpush.bf16.msra.mxu1 %v281_v10  ;;  %v44_v24 = vsub.f32 %v32_v20, %v43_v19  ;;  %v45_v25 = vsub.f32 %v33_v21, %v43_v19  ;;  %v283_v28 = vld [vmem:[%s410_s3] ss:$0 sm:$0xff] }
   0x7   :  { %v275_v37 = vld [vmem:[%s412_s6] sm:$0xff] }
   0x8   :  { %v42_v6 = vsub.f32 %v37_v3, %v40_v5  ;;  %v284_v39 = vld [vmem:[%s411_s5] ss:$0 sm:$0xff] }
   0x9   :  { %v285_v46 = vld [vmem:[%s415_s7] ss:$0 sm:$0xff] }
   0xa   :  { %v46_v7 = vadd.f32 1e-05, %v42_v6  ;;  %185 = vmatpush.bf16.msra.mxu1 %v280_v13 }
   0xc   :  { %286 = vrsqrt.f32 %v46_v7  ;;  %vm53_vm0 = vweird.f32 %v46_v7 }
   0xe   :  { %186 = vmatpush.bf16.msra.mxu1 %v279_v16 }
  0x12   :  { %v287_v9 = vpop.eup %286  ;;  %187 = vmatpush.bf16.msra.mxu1 %v278_v34 }
  0x13   :  { %v48_v11 = vmul.f32 %v287_v9, %v46_v7  ;;  %vm54_vm1 = vweird.f32 %v287_v9 }
  0x14   :  { %vm55_vm2 = vmor %vm53_vm0, %vm54_vm1 }
  0x15   :  { %v49_v12 = vmul.f32 %v287_v9, %v48_v11 }
  0x16   :  { %188 = vmatpush.bf16.msra.mxu1 %v277_v35 }
  0x17   :  { %v50_v14 = vmul.f32 0.5, %v49_v12 }
  0x19   :  { %v51_v15 = vsub.f32 1.5, %v50_v14 }
  0x1a   :  { %189 = vmatpush.bf16.msra.mxu1 %v276_v36 }
  0x1b   :  { %v52_v17 = vmul.f32 %v287_v9, %v51_v15 }
  0x1d   :  { %v56_v18 = vsel %vm55_vm2, %v287_v9, %v52_v17 }
  0x1e   :  { %58 = vst [vmem:[#allocation1] sm:$0xff] %v56_v18  ;;  %190 = vmatpush.bf16.msra.mxu1 %v275_v37 }
  0x25   :  { %v60_v23 = vld [vmem:[#allocation1 + $0x1] ss:$9 sm:$0xff] }
  0x26   :  { %v62_v26 = vmul.f32 %v60_v23, %v35_v22 }
  0x28   :  { %v64_v27 = vperm.slane %v62_v26, 0 }
  0x2a   :  { %v66_v29 = vmul.f32 %v64_v27, %v44_v24  ;;  %v67_v30 = vmul.f32 %v64_v27, %v45_v25 }
  0x2c   :  { %v71_v31 = vadd.f32 %v283_v28, %v66_v29  ;;  %v72_v32 = vadd.f32 %v283_v28, %v67_v30 }
  0x2e   :  { %v73_v33 = vpack.c.bf16 %v72_v32, %v71_v31 }
  0x30   :  { %240 = vmatmul.msk.bf16.vlgmr.msra.gmra.mxu0 %vm94_vm3, %v73_v33 }
  0xad   :  { %v107_v38 = vpop.f32.mrf.mxu0 }
  0xae   :  { %v108_v40 = vadd.f32 %v284_v39, %v107_v38 }
  0xb0   :  { %v112_v43 = vmax.f32 %v108_v40, 0.0 }
  0xb5   :  { %v109_v41 = vpop.f32.mrf.mxu0 }
  0xb6   :  { %v110_v42 = vadd.f32 %v284_v39, %v109_v41 }
  0xb8   :  { %v113_v44 = vmax.f32 %v110_v42, 0.0 }
  0xba   :  { %v114_v45 = vpack.c.bf16 %v113_v44, %v112_v43 }
  0xbc   :  { %191 = vmatmul.bf16.vlgmr.msra.gmra.mxu1 %v114_v45 }
 0x139   :  { %v192_v47 = vpop.f32.mrf.mxu1 }
 0x13a   :  { %v193_v48 = vadd.f32 %v285_v46, %v192_v47 }
 0x13c   :  { %v197_v49 = vadd.f32 %v193_v48, %v71_v31 }
 0x13e   :  { %199 = vst.msk [vmem:[%s416_s8] sm:$0xff] %vm94_vm3, %v197_v49  ;;  %v212_v52 = vmul.f32 %v197_v49, %v197_v49  ;;  %v201_v54 = vsel %vm94_vm3, %v197_v49, 0.0 }
 0x140   :  { %v214_v58 = vsel %vm94_vm3, %v212_v52, 0.0 }
 0x141   :  { %v194_v50 = vpop.f32.mrf.mxu1 }
 0x142   :  { %v195_v51 = vadd.f32 %v285_v46, %v194_v50 }
 0x144   :  { %v198_v53 = vadd.f32 %v195_v51, %v72_v32 }
 0x146   :  { %200 = vst.msk [vmem:[%s416_s8 + $0x8] sm:$0xff] %vm94_vm3, %v198_v53  ;;  %v202_v55 = vsel %vm94_vm3, %v198_v53, 0.0  ;;  %v213_v56 = vmul.f32 %v198_v53, %v198_v53 }
 0x147   :  { %v203_v57 = vadd.f32 %v202_v55, %v201_v54 }
 0x148   :  { %v215_v59 = vsel %vm94_vm3, %v213_v56, 0.0 }
 0x149   :  { %v204_v60 = vrot.slane %v203_v57, 4  ;;  %v216_v61 = vadd.f32 %v215_v59, %v214_v58 }
 0x14b   :  { %v205_v62 = vadd.f32 %v204_v60, %v203_v57  ;;  %v217_v63 = vrot.slane %v216_v61, 4 }
 0x14d   :  { %v206_v0 = vrot.slane %v205_v62, 2  ;;  %v218_v1 = vadd.f32 %v217_v63, %v216_v61 }
 0x14f   :  { %v207_v2 = vadd.f32 %v206_v0, %v205_v62  ;;  %v219_v3 = vrot.slane %v218_v1, 2 }
 0x151   :  { %v208_v4 = vrot.slane %v207_v2, 1  ;;  %v220_v5 = vadd.f32 %v219_v3, %v218_v1 }
 0x153   :  { %v209_v6 = vadd.f32 %v208_v4, %v207_v2  ;;  %v221_v7 = vrot.slane %v220_v5, 1 }
 0x155   :  { %211 = vst.msk [vmem:[%s417_s9] sm:$0x1] %vm210_vm4, %v209_v6  ;;  %v222_v8 = vadd.f32 %v221_v7, %v220_v5 }
 0x157   :  { %223 = vst.msk [vmem:[%s417_s9 + $0x1] sm:$0x1] %vm210_vm4, %v222_v8 }

// kernel: decoder_layer_forward.11
= control target key start
LH: loop header
LB: loop body
LE: loop exit
PB: predicated region body
PF: predicated region fallthrough
CT: control target
= control target key end

     0   :  { %s1580_s0 = inlined_call_operand.vmem [shape: bf16[2,4,8,8], index: 0, kind: input, shape index: {}]   ;;  %s1581_s1 = inlined_call_operand.vmem [shape: bf16[2,4,12,8], index: 1, kind: input, shape index: {}]   ;;  %s1582_s2 = inlined_call_operand.vmem [shape: bf16[2,4,12,8], index: 2, kind: input, shape index: {}]   ;;  %s1583_s3 = inlined_call_operand.vmem [shape: f32[2,8,32], index: 3, kind: input, shape index: {}]   ;;  %s1584_s4 = inlined_call_operand.vmem [shape: bf16[4,8,32], index: 4, kind: input, shape index: {}]   ;;  %s1585_s5 = inlined_call_operand.vmem [shape: f32[1,32], index: 5, kind: input, shape index: {}]   ;;  %s1586_s6 = inlined_call_operand.vmem [shape: f32[2,8,32], index: 6, kind: output, shape index: {0}]   ;;  %s1587_s7 = inlined_call_operand.hbm [shape: f32[2,4,8,12], index: 7, kind: output, shape index: {1}]   ;;  %s1588_s8 = inlined_call_operand.vmem [shape: f32[2,2,32], index: 8, kind: output, shape index: {2}]  }
   0x1   :  { %1589 = sst [smem:[#allocation5_spill]] %s1580_s0 }
   0x2   :  { %1590 = sst [smem:[#allocation6_spill]] %s1581_s1 }
   0x3   :  { %1591 = sst [smem:[#allocation7_spill]] %s1582_s2 }
   0x4   :  { %14 = vsyncpa [#allocation3], 0 }
   0x5   :  { %16 = vsyncpa [#allocation3 + $0x1], 0  ;;  %s1383_s27 = smov 0   ;;  %s1385_s28 = smov 0  }
   0x6   :  { %s1387_s29 = smov 0   ;;  %s1389_s30 = smov 0  }
   0x7   :  { %s1391_s9 = smov 0   ;;  %s1393_s10 = smov 0  }
   0x8 LB: > { %s1094_s11 = sadd.s32 4294967295, %s1334_s10   ;;  %s1095_s12 = sadd.s32 4294967294, %s1334_s10   ;;  %s1334_s10 = sphi %s1393_s10, %s22_s10   ;;  %s1330_s9 = sphi %s1391_s9, %s1601_s9   ;;  %s1326_s30 = sphi %s1389_s30, %s1600_s30   ;;  %s1322_s29 = sphi %s1387_s29, %s1599_s29   ;;  %s1318_s28 = sphi %s1385_s28, %s1598_s28   ;;  %s1314_s27 = sphi %s1383_s27, %s1597_s27  }
   0x9   : > { %s34_s13 = sadd.s32 1, %s1330_s9  ;;  %s221_s14 = sadd.s32 1, %s1322_s29 }
   0xa   : > { %p36_p0 = scmp.ge.s32.totalorder %s34_s13, 2  ;;  %p231_p1 = scmp.ne.s32.totalorder %s1322_s29, %s1318_s28 }
   0xb   : > { %p232_p2 = scmp.eq.s32.totalorder %s1094_s11, 1  ;;  %p237_p3 = scmp.ne.s32.totalorder %s1318_s28, %s1314_s27 }
   0xc   : > { %s1603_s13 = smov (%p36_p0, %s34_s13), 0  ;;  %p238_p5 = scmp.eq.s32.totalorder %s1095_s12, 1 }
   0xd   : > { %p1423_p4 = por %p232_p2, %p231_p1  ;;  %s216_s16 = ssub.s32 %s1330_s9, %s1603_s13 }
   0xe   : > { %p1098_p6 = scmp.ge.s32.totalorder %s1334_s10, 1  ;;  %p219_p7 = scmp.eq.s32.totalorder %s216_s16, 0 }
   0xf   : > { %p1430_p8 = por %p238_p5, %p237_p3  ;;  %p327_p9 = scmp.lt.s32.totalorder %s1334_s10, 3 }
  0x10   : > { %s1436_s18 = scalar_select %p219_p7, %s1322_s29, %s221_s14  }
  0x11   : > { %p328_p10 = pnand %p1098_p6, %p327_p9 }
  0x12   : > { %p393_p11 = scmp.lt.s32.totalorder (!%p328_p10), %s1326_s30, 1  ;;  %s1594_s1 = sld [smem:[#allocation6_spill]] (!%p328_p10) }
  0x13   : > { %331 = sbr.rel (%p328_p10) target bundleno = 730 (0x2da), region = 44  ;;  %s1595_s0 = sld [smem:[#allocation5_spill]] (!%p328_p10) }
  0x14   : > { %s1596_s2 = sld [smem:[#allocation7_spill]] (!%p328_p10) }
  0x18   : > { %s1440_s19 = scalar_select %p393_p11, %s1326_s30, 1  ;;  %vm461_vm0 = vcmask 64512   ;;  %vm553_vm1 = vcmask 97280   ;;  %vm678_vm2 = vcmask 1045504  }
  0x1a   : > { %s1162_s20 = sshll.u32 %s1440_s19, 5  ;;  %s1161_s21 = sshll.u32 %s1440_s19, 4 }
  0x1b   : > { %s405_s24 = scalar_lea.vmem %s1594_s1, %s1162_s20  ;;  %s400_s11 = scalar_lea.vmem %s1595_s0, %s1161_s21 }
  0x1c   : > { %v1111_v0 = vld [vmem:[%s405_s24] sm:$0xf]  ;;  %v1164_v1 = vld [vmem:[%s405_s24] sm:$0x30]  ;;  %v1121_v2 = vld [vmem:[%s405_s24 + $0x10] sm:$0xf]  ;;  %s410_s16 = scalar_lea.vmem %s1596_s2, %s1162_s20 }
  0x1d   : > { %v1112_v3 = vor.u32 %v1164_v1, %v1111_v0  ;;  %v1166_v4 = vld [vmem:[%s405_s24 + $0x10] sm:$0x30]  ;;  %v1126_v5 = vld [vmem:[%s405_s24 + $0x18] sm:$0xf]  ;;  %v1167_v6 = vld [vmem:[%s405_s24 + $0x18] sm:$0x30] }
  0x1e   : > { %v1122_v7 = vor.u32 %v1166_v4, %v1121_v2  ;;  %v1127_v8 = vor.u32 %v1167_v6, %v1126_v5  ;;  %v1174_v9 = vld [vmem:[%s400_s11] sm:$0xff]   ;;  %v1181_v10 = vld [vmem:[%s400_s11 + $0x8] sm:$0xff]   ;;  %v1141_v2 = vld [vmem:[%s410_s16 + $0x10] sm:$0xf]  ;;  %s383_s20 = sand.u32 1, %s1318_s28  }
  0x1f   : > { %v1116_v11 = vld [vmem:[%s405_s24 + $0x8] sm:$0xf]  ;;  %v466_v12 = vsel %vm461_vm0, %v1112_v3, 0  ;;  %v1175_v13 = vunpack.c.l.bf16 %v1174_v9  ;;  %v1179_v14 = vunpack.c.l.bf16 %v1181_v10  ;;  %v1180_v15 = vunpack.c.h.bf16 %v1181_v10  ;;  %v1165_v16 = vld [vmem:[%s405_s24 + $0x8] sm:$0x30]  ;;  %s1099_s21 = sshll.u32 %s383_s20, 5 }
  0x20   : > { %475 = vmatpush.bf16.xpose.msra.mxu0 %v466_v12  ;;  %v514_v17 = vsel %vm461_vm0, %v1122_v7, 0  ;;  %v538_v18 = vsel %vm461_vm0, %v1127_v8, 0  ;;  %v1117_v19 = vor.u32 %v1165_v16, %v1116_v11  ;;  %v1176_v20 = vunpack.c.h.bf16 %v1174_v9  ;;  %v1131_v62 = vld [vmem:[%s410_s16] sm:$0xf]  ;;  %v1168_v63 = vld [vmem:[%s410_s16] sm:$0x30] }
  0x21   : > { %523 = vmatpush.bf16.xpose.msra.mxu2 %v514_v17  ;;  %547 = vmatpush.bf16.xpose.msra.mxu3 %v538_v18  ;;  %v440_v21 = vmul.f32 0.35355338, %v1175_v13  ;;  %v442_v22 = vmul.f32 0.35355338, %v1179_v14  ;;  %v443_v23 = vmul.f32 0.35355338, %v1180_v15  ;;  %v1132_v0 = vor.u32 %v1168_v63, %v1131_v62 }
  0x22   : > { %v490_v24 = vsel %vm461_vm0, %v1117_v19, 0  ;;  %v441_v25 = vmul.f32 0.35355338, %v1176_v20  ;;  %v1170_v3 = vld [vmem:[%s410_s16 + $0x10] sm:$0x30]  ;;  %s1493_s22 = scalar_lea.vmem [#allocation2], %s1099_s21 }
  0x23   : > { %v444_v26 = vpack.c.bf16 %v440_v21, %v440_v21  ;;  %499 = vmatpush.bf16.xpose.msra.mxu1 %v490_v24  ;;  %v446_v27 = vpack.c.bf16 %v442_v22, %v442_v22  ;;  %v447_v28 = vpack.c.bf16 %v443_v23, %v443_v23  ;;  %v680_v1 = vsel %vm678_vm2, %v1132_v0, 0  ;;  %v1136_v5 = vld [vmem:[%s410_s16 + $0x8] sm:$0xf]  ;;  %v1169_v6 = vld [vmem:[%s410_s16 + $0x8] sm:$0x30]  ;;  %s1172_s21 = sshll.u32 %s1326_s30, 5 }
  0x24   : > { %v445_v29 = vpack.c.bf16 %v441_v25, %v441_v25  ;;  %v1142_v4 = vor.u32 %v1170_v3, %v1141_v2  ;;  %v1137_v8 = vor.u32 %v1169_v6, %v1136_v5  ;;  %v1146_v11 = vld [vmem:[%s410_s16 + $0x18] sm:$0xf]  ;;  %v1171_v12 = vld [vmem:[%s410_s16 + $0x18] sm:$0x30]  ;;  %v774_v3 = vld [vmem:[%s1584_s4] sm:$0xf]  ;;  %s913_s25 = scalar_lea.hbm %s1587_s7, %s1172_s21 }
  0x25   : > { %v1147_v13 = vor.u32 %v1171_v12, %v1146_v11  ;;  %v1152_v5 = vld [vmem:[%s1584_s4 + $0x8] sm:$0xf]  ;;  %s914_s26 = sshll.u32 %s1493_s22, 4  ;;  %s916_s11 = sshll.u32 %s913_s25, 4  ;;  %s915_s26 = int_to_ptr.vmem [resolvable:$true] %s914_s26  ;;  %s917_s11 = int_to_ptr.hbm [resolvable:$true] %s916_s11 }
  0x26   : > { %v728_v7 = vsel %vm678_vm2, %v1142_v4, 0  ;;  %v704_v9 = vsel %vm678_vm2, %v1137_v8, 0  ;;  %v1150_v8 = vld [vmem:[%s1584_s4 + $0x4] sm:$0xf]  ;;  %s893_s12 = scalar_lea.sflag [#allocation3], %s383_s20  ;;  %s1270_s14 = sshra.s32 %s917_s11, 4  ;;  %s1271_s14 = int_to_ptr.hbm [resolvable:$true] %s1270_s14 }
  0x27   : > { %1113 = vmatmul.msk.bf16.vlgmr.msra.gmra.mxu0 %vm461_vm0, %v444_v26  ;;  %v752_v14 = vsel %vm678_vm2, %v1147_v13, 0  ;;  %s1272_s16 = scalar_lea.hbm %s1271_s14, 32  ;;  %s1276_s30 = scalar_lea.hbm %s1587_s7, 64 }
  0x28   : > { %1123 = vmatmul.msk.bf16.vlgmr.msra.gmra.mxu2 %vm461_vm0, %v446_v27  ;;  %1128 = vmatmul.msk.bf16.vlgmr.msra.gmra.mxu3 %vm461_vm0, %v447_v28  ;;  %p1273_p12 = scmp.ne.s32.totalorder %s1271_s14, %s1272_s16  ;;  %p1277_p1 = scmp.lt.s32.totalorder %s1271_s14, %s1587_s7 }
  0x29   : > { %689 = vmatpush.bf16.msrb.mxu0 %v680_v1  ;;  %737 = vmatpush.bf16.msrb.mxu2 %v728_v7  ;;  %p1278_p2 = scmp.lt.s32.totalorder %s1276_s30, %s1272_s16 }
  0x2a   : > { %1118 = vmatmul.msk.bf16.vlgmr.msra.gmra.mxu1 %vm461_vm0, %v445_v29  ;;  %761 = vmatpush.bf16.msrb.mxu3 %v752_v14  ;;  %p1274_p13 = pnand %p1273_p12, %p1423_p4 }
  0x2b   : > { %713 = vmatpush.bf16.msrb.mxu1 %v704_v9  ;;  %p1279_p3 = por %p1278_p2, %p1277_p1 }
  0x2c   : > { %p1275_p0 = pneg %p1274_p13 }
  0x2e   : > { %p1280_p5 = pnand %p1279_p3, %p1275_p0 }
  0xa4   : > { %v477_v30 = vpop.f32.mrf.mxu0 }
  0xa5   : > { %v554_v31 = vsel %vm553_vm1, %v477_v30, -inf }
  0xa6   : > { %555 = vmax.xlane.f32.xlu1 %v554_v31 }
  0xa7   : > { %v501_v32 = vpop.f32.mrf.mxu1 }
  0xa8   : > { %v557_v35 = vsel %vm553_vm1, %v501_v32, -inf }
  0xab   : > { %v525_v33 = vpop.f32.mrf.mxu2  ;;  %v549_v34 = vpop.f32.mrf.mxu3 }
  0xac   : > { %v560_v36 = vsel %vm553_vm1, %v525_v33, -inf  ;;  %v479_v37 = vpop.f32.mrf.mxu0  ;;  %v563_v39 = vsel %vm553_vm1, %v549_v34, -inf }
  0xad   : > { %561 = vmax.xlane.f32.xlu0 %v560_v36 }
  0xae   : > { %558 = vmax.xlane.f32.xlu1 %v557_v35 }
  0xaf   : > { %v503_v38 = vpop.f32.mrf.mxu1 }
  0xb3   : > { %v527_v40 = vpop.f32.mrf.mxu2  ;;  %v551_v41 = vpop.f32.mrf.mxu3 }
  0xb5   : > { %564 = vmax.xlane.f32.xlu0 %v563_v39 }
 0x119   : > { %v556_v42 = vpop.xlane.xlu1 %555 }
 0x11a   : > { %v566_v43 = vsub.f32 %v477_v30, %v556_v42 }
 0x11c   : > { %v570_v44 = vmul.f32 1.442695, %v566_v43 }
 0x11e   : > { %1240 = vpow2.f32 %v570_v44 }
 0x120   : > { %v562_v45 = vpop.xlane.xlu0 %561 }
 0x121   : > { %v568_v46 = vsub.f32 %v525_v33, %v562_v45  ;;  %v559_v47 = vpop.xlane.xlu1 %558 }
 0x122   : > { %v567_v48 = vsub.f32 %v501_v32, %v559_v47 }
 0x123   : > { %v574_v49 = vmul.f32 1.442695, %v568_v46 }
 0x124   : > { %v1464_v50 = vpop.eup %1240  ;;  %v572_v51 = vmul.f32 1.442695, %v567_v48 }
 0x125   : > { %1242 = vpow2.f32 %v574_v49  ;;  %v578_v52 = vsel %vm553_vm1, %v1464_v50, 0.0 }
 0x126   : > { %1244 = vpow2.f32 %v572_v51  ;;  %579 = vadd.xlane.f32.xlu0 %v578_v52 }
 0x128   : > { %v565_v53 = vpop.xlane.xlu0 %564 }
 0x129   : > { %v569_v54 = vsub.f32 %v549_v34, %v565_v53 }
 0x12b   : > { %v1468_v55 = vpop.eup %1242  ;;  %v576_v56 = vmul.f32 1.442695, %v569_v54 }
 0x12c   : > { %v1470_v57 = vpop.eup %1244  ;;  %v584_v58 = vsel %vm553_vm1, %v1468_v55, 0.0 }
 0x12d   : > { %1246 = vpow2.f32 %v576_v56  ;;  %585 = vadd.xlane.f32.xlu2 %v584_v58  ;;  %v581_v59 = vsel %vm553_vm1, %v1470_v57, 0.0 }
 0x12e   : > { %582 = vadd.xlane.f32.xlu1 %v581_v59 }
 0x133   : > { %v1476_v60 = vpop.eup %1246 }
 0x134   : > { %v587_v61 = vsel %vm553_vm1, %v1476_v60, 0.0 }
 0x135   : > { %588 = vadd.xlane.f32.xlu2 %v587_v61 }
 0x199   : > { %v580_v10 = vpop.xlane.xlu0 %579 }
 0x19a   : > { %1248 = vrcp.f32 %v580_v10  ;;  %v601_v20 = vand.u32 2147483648, %v580_v10  ;;  %v599_v22 = vand.u32 2147483647, %v580_v10  ;;  %vm595_vm4 = vweird.f32 %v580_v10 }
 0x19c   : > { %v602_v26 = vor.u32 1.1754944e-38, %v601_v20  ;;  %vm600_vm6 = vcmp.eq.f32.partialorder %v599_v22, 8.507059e+37 }
 0x1a0   : > { %v1249_v15 = vpop.eup %1248  ;;  %v586_v16 = vpop.xlane.xlu2 %585 }
 0x1a1   : > { %v591_v17 = vmul.f32 %v1249_v15, %v580_v10  ;;  %1250 = vrcp.f32 %v586_v16  ;;  %v583_v18 = vpop.xlane.xlu1 %582  ;;  %vm596_vm3 = vweird.f32 %v1249_v15  ;;  %v631_v33 = vand.u32 2147483648, %v586_v16 }
 0x1a2   : > { %1252 = vrcp.f32 %v583_v18  ;;  %vm597_vm5 = vmor %vm595_vm4, %vm596_vm3  ;;  %v629_v37 = vand.u32 2147483647, %v586_v16  ;;  %v616_v38 = vand.u32 2147483648, %v583_v18  ;;  %v614_v40 = vand.u32 2147483647, %v583_v18 }
 0x1a3   : > { %v592_v19 = vsub.f32 1.0, %v591_v17  ;;  %vm625_vm9 = vweird.f32 %v586_v16  ;;  %v632_v44 = vor.u32 1.1754944e-38, %v631_v33  ;;  %vm610_vm11 = vweird.f32 %v583_v18 }
 0x1a4   : > { %vm630_vm12 = vcmp.eq.f32.partialorder %v629_v37, 8.507059e+37  ;;  %v617_v47 = vor.u32 1.1754944e-38, %v616_v38  ;;  %vm615_vm14 = vcmp.eq.f32.partialorder %v614_v40, 8.507059e+37 }
 0x1a5   : > { %v593_v21 = vmul.f32 %v1249_v15, %v592_v19 }
 0x1a7   : > { %v1251_v23 = vpop.eup %1250  ;;  %v594_v24 = vadd.f32 %v1249_v15, %v593_v21 }
 0x1a8   : > { %v1253_v25 = vpop.eup %1252  ;;  %v621_v27 = vmul.f32 %v1251_v23, %v586_v16  ;;  %v589_v28 = vpop.xlane.xlu2 %588  ;;  %vm626_vm7 = vweird.f32 %v1251_v23 }
 0x1a9   : > { %v598_v29 = vsel %vm597_vm5, %v1249_v15, %v594_v24  ;;  %v606_v30 = vmul.f32 %v1253_v25, %v583_v18  ;;  %1254 = vrcp.f32 %v589_v28  ;;  %vm611_vm8 = vweird.f32 %v1253_v25  ;;  %vm627_vm10 = vmor %vm625_vm9, %vm626_vm7 }
 0x1aa   : > { %v603_v31 = vsel %vm600_vm6, %v602_v26, %v598_v29  ;;  %v622_v32 = vsub.f32 1.0, %v621_v27  ;;  %vm612_vm13 = vmor %vm610_vm11, %vm611_vm8  ;;  %v646_v54 = vand.u32 2147483648, %v589_v28  ;;  %v644_v59 = vand.u32 2147483647, %v589_v28 }
 0x1ab   : > { %v607_v34 = vsub.f32 1.0, %v606_v30  ;;  %v650_v35 = vmul.f32 %v1464_v50, %v603_v31  ;;  %vm640_vm2 = vweird.f32 %v589_v28  ;;  %vm778_vm5 = vcmask 1043456  }
 0x1ac   : > { %v623_v36 = vmul.f32 %v1251_v23, %v622_v32  ;;  %v647_v0 = vor.u32 1.1754944e-38, %v646_v54  ;;  %vm645_vm4 = vcmp.eq.f32.partialorder %v644_v59, 8.507059e+37  ;;  %v780_v4 = vsel %vm778_vm5, %v774_v3, 0 }
 0x1ad   : > { %v608_v39 = vmul.f32 %v1253_v25, %v607_v34  ;;  %654 = vst.msk [vmem:[%s1493_s22] sm:$0xff] %vm553_vm1, %v650_v35  ;;  %v658_v41 = vpack.c.bf16 %v650_v35, %v650_v35  ;;  %789 = vmatpush.bf16.msra.mxu0 %v780_v4  ;;  %v826_v6 = vsel %vm778_vm5, %v1152_v5, 0  ;;  %v803_v9 = vsel %vm778_vm5, %v1150_v8, 0 }
 0x1ae   : > { %v624_v42 = vadd.f32 %v1251_v23, %v623_v36  ;;  %835 = vmatpush.bf16.msra.mxu2 %v826_v6  ;;  %812 = vmatpush.bf16.msra.mxu1 %v803_v9 }
 0x1af   : > { %v1255_v43 = vpop.eup %1254  ;;  %v609_v45 = vadd.f32 %v1253_v25, %v608_v39  ;;  %1133 = vmatmul.msk.bf16.vlgmr.msrb.gmra.mxu0 %vm553_vm1, %v658_v41 }
 0x1b0   : > { %v628_v46 = vsel %vm627_vm10, %v1251_v23, %v624_v42  ;;  %v636_v48 = vmul.f32 %v1255_v43, %v589_v28  ;;  %vm641_vm15 = vweird.f32 %v1255_v43 }
 0x1b1   : > { %v613_v49 = vsel %vm612_vm13, %v1253_v25, %v609_v45  ;;  %v633_v50 = vsel %vm630_vm12, %v632_v44, %v628_v46  ;;  %vm642_vm3 = vmor %vm640_vm2, %vm641_vm15 }
 0x1b2   : > { %v618_v51 = vsel %vm615_vm14, %v617_v47, %v613_v49  ;;  %v637_v52 = vsub.f32 1.0, %v636_v48  ;;  %v652_v53 = vmul.f32 %v1468_v55, %v633_v50 }
 0x1b3   : > { %v651_v56 = vmul.f32 %v1470_v57, %v618_v51 }
 0x1b4   : > { %v638_v58 = vmul.f32 %v1255_v43, %v637_v52  ;;  %656 = vst.msk [vmem:[%s1493_s22 + $0x10] sm:$0xff] %vm553_vm1, %v652_v53  ;;  %v660_v61 = vpack.c.bf16 %v652_v53, %v652_v53 }
 0x1b5   : > { %655 = vst.msk [vmem:[%s1493_s22 + $0x8] sm:$0xff] %vm553_vm1, %v651_v56  ;;  %v659_v62 = vpack.c.bf16 %v651_v56, %v651_v56 }
 0x1b6   : > { %v639_v63 = vadd.f32 %v1255_v43, %v638_v58  ;;  %1143 = vmatmul.msk.bf16.vlgmr.msrb.gmra.mxu2 %vm553_vm1, %v660_v61 }
 0x1b7   : > { %1138 = vmatmul.msk.bf16.vlgmr.msrb.gmra.mxu1 %vm553_vm1, %v659_v62 }
 0x1b8   : > { %v643_v55 = vsel %vm642_vm3, %v1255_v43, %v639_v63 }
 0x1b9   : > { %v648_v57 = vsel %vm645_vm4, %v647_v0, %v643_v55 }
 0x1ba   : > { %v653_v1 = vmul.f32 %v1476_v60, %v648_v57  ;;  %v1154_v60 = vld [vmem:[%s1584_s4 + $0xc] sm:$0xf] }
 0x1bb   : > { %v849_v7 = vsel %vm778_vm5, %v1154_v60, 0 }
 0x1bc   : > { %657 = vst.msk [vmem:[%s1493_s22 + $0x18] sm:$0xff] %vm553_vm1, %v653_v1  ;;  %v661_v2 = vpack.c.bf16 %v653_v1, %v653_v1  ;;  %858 = vmatpush.bf16.msra.mxu3 %v849_v7 }
 0x1be   : > { %1148 = vmatmul.msk.bf16.vlgmr.msrb.gmra.mxu3 %vm553_vm1, %v661_v2 }
 0x22c   : > { %v691_v10 = vpop.f32.mrf.mxu0 }
 0x22d   : > { %v773_v11 = vpack.c.bf16 %v691_v10, %v691_v10 }
 0x22f   : > { %1149 = vmatmul.msk.bf16.vlgmr.msra.gmra.mxu0 %vm461_vm0, %v773_v11 }
 0x234   : > { %v693_v12 = vpop.f32.mrf.mxu0  ;;  %v715_v13 = vpop.f32.mrf.mxu1 }
 0x235   : > { %v796_v14 = vpack.c.bf16 %v715_v13, %v715_v13 }
 0x237   : > { %1151 = vmatmul.msk.bf16.vlgmr.msra.gmra.mxu1 %vm461_vm0, %v796_v14 }
 0x239   : > { %v739_v15 = vpop.f32.mrf.mxu2 }
 0x23a   : > { %v819_v16 = vpack.c.bf16 %v739_v15, %v739_v15 }
 0x23c   : > { %1153 = vmatmul.msk.bf16.vlgmr.msra.gmra.mxu2 %vm461_vm0, %v819_v16  ;;  %v717_v17 = vpop.f32.mrf.mxu1 }
 0x241   : > { %v741_v18 = vpop.f32.mrf.mxu2  ;;  %v763_v19 = vpop.f32.mrf.mxu3 }
 0x242   : > { %v842_v20 = vpack.c.bf16 %v763_v19, %v763_v19 }
 0x244   : > { %1155 = vmatmul.msk.bf16.vlgmr.msra.gmra.mxu3 %vm461_vm0, %v842_v20 }
 0x249   : > { %v765_v21 = vpop.f32.mrf.mxu3 }
 0x24a   : > { %1283 = shalt.err (!%p1280_p5)
}
 0x24b   : > { %s1336_s20 = smov 128   ;;  %s1337_s22 = smov 8   ;;  %v1239_v25 = vld [vmem:[%s1585_s5] ss:$0 sm:$0xff]  ;;  %vm865_vm0 = vcmask 261120   ;;  %vm874_vm1 = vcmask 253952  }
 0x24c   : > { %1182 = dma.vmem_to_hbm [thread:$0]  (%p1423_p4), %s915_s26, 512, %s917_s11, %s893_s12, %s1336_s20, %s1336_s20, %s1337_s22  }
 0x24d   : > { %s1106_s21 = sshll.u32 %s1440_s19, 3  ;;  %s1108_s12 = sshll.u32 %s1440_s19, 1 }
 0x24e   : > { %s417_s24 = scalar_lea.vmem %s1583_s3, %s1106_s21  ;;  %s424_s11 = scalar_lea.vmem %s1586_s6, %s1106_s21 }
 0x24f   : > { %v767_v26 = vld [vmem:[%s417_s24] sm:$0xff]  ;;  %s429_s30 = scalar_lea.vmem %s1588_s8, %s1108_s12 }
 0x250   : > { %v772_v28 = vadd.f32 %v1239_v25, %v767_v26 }
 0x2ac   : > { %v791_v22 = vpop.f32.mrf.mxu0 }
 0x2ad   : > { %v795_v30 = vadd.f32 %v791_v22, %v772_v28 }
 0x2b4   : > { %v793_v23 = vpop.f32.mrf.mxu0  ;;  %v814_v24 = vpop.f32.mrf.mxu1 }
 0x2b5   : > { %v818_v31 = vadd.f32 %v814_v24, %v795_v30 }
 0x2bc   : > { %v816_v27 = vpop.f32.mrf.mxu1 }
 0x2bf   : > { %v837_v29 = vpop.f32.mrf.mxu2 }
 0x2c0   : > { %v841_v32 = vadd.f32 %v837_v29, %v818_v31 }
 0x2c7   : > { %v839_v33 = vpop.f32.mrf.mxu2  ;;  %v860_v34 = vpop.f32.mrf.mxu3 }
 0x2c8   : > { %v864_v35 = vadd.f32 %v860_v34, %v841_v32 }
 0x2ca   : > { %866 = vst.msk [vmem:[%s424_s11] sm:$0xff] %vm865_vm0, %v864_v35  ;;  %v867_v36 = vsel %vm865_vm0, %v864_v35, 0.0  ;;  %v876_v37 = vmul.f32 %v864_v35, %v864_v35 }
 0x2cb   : > { %v868_v38 = vrot.slane %v867_v36, 4 }
 0x2cc   : > { %v877_v39 = vsel %vm865_vm0, %v876_v37, 0.0 }
 0x2cd   : > { %v869_v40 = vadd.f32 %v868_v38, %v867_v36  ;;  %v878_v41 = vrot.slane %v877_v39, 4 }
 0x2cf   : > { %v870_v42 = vrot.slane %v869_v40, 2  ;;  %v879_v43 = vadd.f32 %v878_v41, %v877_v39  ;;  %v862_v44 = vpop.f32.mrf.mxu3 }
 0x2d1   : > { %v871_v45 = vadd.f32 %v870_v42, %v869_v40  ;;  %v880_v46 = vrot.slane %v879_v43, 2 }
 0x2d3   : > { %v872_v47 = vrot.slane %v871_v45, 1  ;;  %v881_v48 = vadd.f32 %v880_v46, %v879_v43 }
 0x2d5   : > { %v873_v49 = vadd.f32 %v872_v47, %v871_v45  ;;  %v882_v50 = vrot.slane %v881_v48, 1 }
 0x2d7   : > { %875 = vst.msk [vmem:[%s429_s30] sm:$0x1] %vm874_vm1, %v873_v49  ;;  %v883_v51 = vadd.f32 %v882_v50, %v881_v48 }
 0x2d9   : > { %884 = vst.msk [vmem:[%s429_s30 + $0x1] sm:$0x1] %vm874_vm1, %v883_v51 }
 0x2da PF: > { %p1188_p4 = scmp.ge.s32.totalorder %s1334_s10, 2  ;;  %s945_s19 = sand.u32 1, %s1314_s27  }
 0x2db   : > { %s946_s23 = scalar_lea.sflag [#allocation3], %s945_s19 }
 0x2dc   : > { %p1185_p6 = pnand %p1188_p4, %p1430_p8 }
 0x2de   : > { %p1186_p7 = pneg %p1185_p6 }
 0x2e0   : > { %1309 = dma.done.wait (%p1186_p7), %s946_s23, 512  }
 0x2e1   : > { %1311 = vsyncadd (%p1186_p7), %s946_s23, 4294966784  ;;  %s22_s10 = sadd.s32 1, %s1334_s10   ;;  %s1597_s27 = smov %s1318_s28 }
 0x2e2   : > { %p19_p9 = scmp.ge.s32.totalorder %s22_s10, 4   ;;  %s1598_s28 = smov %s1322_s29 }
 0x2e3   : > { %s1599_s29 = smov %s1436_s18  ;;  %s1600_s30 = smov %s1330_s9 }
 0x2e4   : > { %s1601_s9 = smov %s1603_s13  ;;  %21 = sbr.rel (!%p19_p9) target bundleno = 8 (0x8), region = 115 }
 0x2e9   :  { %960 = vsyncpa [#allocation3], 1 }
 0x2ea   :  { %962 = vsyncpa [#allocation3 + $0x1], 1 }

</bundles_post_ra>
